<compile_context>
chip_gen: v7x
topology: tpu7x:2x2x1
jax: 0.10.0
libtpu: 0.0.40
codegen_flags: <defaults>
</compile_context>

<pallas_src>
import jax
import jax.numpy as jnp
import numpy as np
from jax.experimental import pallas as pl
from jax.experimental.pallas import tpu as pltpu


def _round_up(v, m):
    return ((v + m - 1) // m) * m


# -----------------------------------------------------------------------------
# Pallas kernel: `block_b` graphs per grid step.
# -----------------------------------------------------------------------------
def _dense_sage_gnn_kernel(
    x_ref, adj_ref, mask_ref,
    wrel1, brel1, wroot1,
    wrel2, brel2, wroot2,
    wrel3, brel3, wroot3,
    bn1s, bn1b, bn2s, bn2b, bn3s, bn3b,
    wlin1, wlin2, wlin3, blin,
    out_ref,
):
    bblk, n, din1 = x_ref.shape          # din1 = din + 1 (ones column appended)
    m = bblk * n

    adj = adj_ref[...]                   # (Bblk, N, N) bf16 (0/1, exact)
    mask2d = mask_ref[...].reshape(m, 1) # (M, 1) f32, hoisted once

    # Layer-1 neighbour sum on the MXU (bf16 inputs, f32 accumulate).  The
    # appended ones column makes the degree (adj row sums, exact small ints)
    # fall out of the same batched matmul -- no f32 adj copy, no XLU reduce.
    x0 = x_ref[...]                                            # (Bblk, N, din+1) f32
    agg1 = jnp.einsum("bij,bjf->bif", adj, x0.astype(jnp.bfloat16),
                      preferred_element_type=jnp.float32)      # (Bblk, N, din+1)
    deg = jnp.maximum(agg1[..., din1 - 1:din1], 1.0)           # clamp(min=1)
    inv_deg = pl.reciprocal(deg, approx=True)                  # EUP slot, (Bblk,N,1)

    x0_2d = x0.reshape(m, din1)

    def sage_bn_relu(agg3d, x2d, wr, br, wo, s, t):
        fo = wr.shape[-1]
        # DenseSAGEConv neighbour mean + lin_rel + lin_root into one f32 acc.
        agg2d = (agg3d * inv_deg).reshape(m, agg3d.shape[-1])
        h = (jnp.dot(agg2d, wr[...], preferred_element_type=jnp.float32)
             + jnp.dot(x2d, wo[...], preferred_element_type=jnp.float32)
             + br[...])
        # normalize=True -> L2 row normalization (eps = 1e-12) via rsqrt; fold
        # the node mask into the same per-row scale.
        inv = jax.lax.rsqrt(
            jnp.maximum(jnp.sum(h * h, axis=-1, keepdims=True), 1e-24))
        h = h * (inv * mask2d)
        # BatchNorm (eval-mode folded per-channel affine) + ReLU
        h = jnp.maximum(h * s[...] + t[...], 0.0)
        # Carried activation for the next aggregation is bf16 (it is the matmul
        # input anyway); only the 2D f32 slab stays for the dense lins.
        return h.reshape(bblk, n, fo).astype(jnp.bfloat16), h

    # ---- layer 1 (wrel1/wroot1 carry a zero last row -> ones column ignored)
    x1_bf, x1_2d = sage_bn_relu(agg1, x0_2d, wrel1, brel1, wroot1, bn1s, bn1b)
    # Accumulate the final-linear partials eagerly so at most one extra f32
    # activation slab stays live at any time (lower vreg/VMEM pressure).
    y = jnp.dot(x1_2d, wlin1[...], preferred_element_type=jnp.float32) + blin[...]

    # ---- layer 2
    agg2 = jnp.einsum("bij,bjf->bif", adj, x1_bf,
                      preferred_element_type=jnp.float32)
    x2_bf, x2_2d = sage_bn_relu(agg2, x1_2d, wrel2, brel2, wroot2, bn2s, bn2b)
    y = y + jnp.dot(x2_2d, wlin2[...], preferred_element_type=jnp.float32)

    # ---- layer 3
    agg3 = jnp.einsum("bij,bjf->bif", adj, x2_bf,
                      preferred_element_type=jnp.float32)
    _, x3_2d = sage_bn_relu(agg3, x2_2d, wrel3, brel3, wroot3, bn3s, bn3b)
    y = y + jnp.dot(x3_2d, wlin3[...], preferred_element_type=jnp.float32)

    # final lin(cat([x1,x2,x3])).relu() already accumulated as three partial
    # matmuls (no lane-dim concat); store a lane-dense, 128-padded block.
    out_ref[...] = jnp.maximum(y, 0.0).reshape(bblk, n, out_ref.shape[-1])


# -----------------------------------------------------------------------------
# Wrapper
# -----------------------------------------------------------------------------
def dense_sage_gnn(x, adj, mask, params, *, block_b=4):
    B, N, din = x.shape
    dhid = params["wrel1"].shape[1]
    dout = params["wrel3"].shape[1]
    din1 = din + 1
    # Lane-dense 128-padded output block (unmasked vst).  On v5e with small dout
    # the 8x writeback amplification may lose to a masked dout-wide store;
    # revisit per generation if output writeback dominates the profile.
    out_pad = _round_up(dout, 128)

    # N padded to a multiple of 16: bf16 adjacency packs two rows per sublane,
    # so 16-row alignment keeps the aggregation tiles unmasked/packed.
    n_pad = _round_up(max(N, 16), 16)

    # Degree trick: append a ones feature column; the layer-1 aggregation then
    # yields the adjacency row sums on the MXU for free.
    x = jnp.concatenate([x, jnp.ones((B, N, 1), x.dtype)], axis=-1)

    if n_pad != N:
        pn = n_pad - N
        x = jnp.pad(x, ((0, 0), (0, pn), (0, 0)))
        adj = jnp.pad(adj, ((0, 0), (0, pn), (0, pn)))
        mask = jnp.pad(mask, ((0, 0), (0, pn), (0, 0)))

    # adjacency is 0/1 -> bf16 is exact.  Callers should store/pass adj as bf16
    # end-to-end so no extra HBM pass is paid here (adj is the largest tensor).
    if adj.dtype != jnp.bfloat16:
        adj = adj.astype(jnp.bfloat16)

    # layer-1 weights gain a zero last row so the appended ones column is a
    # no-op for lin_rel / lin_root.
    wrel1 = jnp.pad(params["wrel1"], ((0, 1), (0, 0)))
    wroot1 = jnp.pad(params["wroot1"], ((0, 1), (0, 0)))

    # Split the final linear (no lane-dim concat in-kernel) and pad its output
    # columns so the kernel's output stores are lane-dense (128 lanes).
    wlin, blin = params["wlin"], params["blin"]
    cpad = out_pad - dout
    wlin1 = jnp.pad(wlin[:dhid], ((0, 0), (0, cpad)))
    wlin2 = jnp.pad(wlin[dhid:2 * dhid], ((0, 0), (0, cpad)))
    wlin3 = jnp.pad(wlin[2 * dhid:], ((0, 0), (0, cpad)))
    blin_p = jnp.pad(blin, ((0, 0), (0, cpad)))

    weight_args = [
        wrel1, params["brel1"], wroot1,
        params["wrel2"], params["brel2"], params["wroot2"],
        params["wrel3"], params["brel3"], params["wroot3"],
        params["bn1s"], params["bn1b"], params["bn2s"], params["bn2b"],
        params["bn3s"], params["bn3b"],
        wlin1, wlin2, wlin3, blin_p,
    ]

    # ---- VMEM budgeting with the real sublane/lane-padded tile sizes. --------
    # Conservative 32 MiB target fits v7x's 64 MiB physical VMEM per TC with
    # headroom; single-TC v5e/v6e (128 MiB) could afford a larger budget/block_b.
    def _padded_bytes(a):
        r, c = a.shape
        return _round_up(r, 8) * _round_up(c, 128) * 4

    weight_bytes = sum(_padded_bytes(w) for w in weight_args)

    def _vmem_bytes(bb):
        x_blk = bb * n_pad * _round_up(din1, 128) * 4
        adj_blk = bb * _round_up(n_pad, 16) * _round_up(n_pad, 128) * 2  # bf16
        mask_blk = bb * n_pad * 128 * 4
        out_blk = bb * n_pad * out_pad * 4
        pipeline = 2 * (x_blk + adj_blk + mask_blk + out_blk)   # double-buffered
        m_rows = bb * n_pad
        dh = _round_up(dhid, 128)
        # live in-kernel activations: agg f32 + h f32 + carried bf16 + y acc
        live = m_rows * (dh * (2 * 4 + 2) + out_pad * 4)
        # weights are double-buffered by default.
        # TODO(synk): single-buffer the constant weight BlockSpecs with
        #             pipeline_mode=pl.Buffered(1) to free more headroom.
        return pipeline + 2 * weight_bytes + live

    VMEM_TARGET = 32 * 1024 * 1024
    block_b = max(1, min(block_b, B))
    while block_b > 1 and _vmem_bytes(block_b) > VMEM_TARGET:
        block_b -= 1
    # v7x note: prefer an even number of grid steps (two TensorCores share the
    # "parallel" axis); the demo uses B=8, block_b=4 -> grid=(2,).
    vmem_limit = int(min(56 * 1024 * 1024,
                         max(2 * _vmem_bytes(block_b), 32 * 1024 * 1024)))

    b_pad = _round_up(B, block_b)
    if b_pad != B:
        pb = b_pad - B
        x = jnp.pad(x, ((0, pb), (0, 0), (0, 0)))
        adj = jnp.pad(adj, ((0, pb), (0, 0), (0, 0)))
        mask = jnp.pad(mask, ((0, pb), (0, 0), (0, 0)))

    def _batched(shape):
        return pl.BlockSpec(shape, lambda b: (b, 0, 0))

    def _replicated(shape):
        nd = len(shape)
        return pl.BlockSpec(shape, lambda b, _nd=nd: (0,) * _nd)

    in_specs = [
        _batched((block_b, n_pad, din1)),     # x (+ ones column)
        _batched((block_b, n_pad, n_pad)),    # adj (bf16)
        _batched((block_b, n_pad, 1)),        # mask
    ] + [_replicated(w.shape) for w in weight_args]

    out = pl.pallas_call(
        _dense_sage_gnn_kernel,
        out_shape=jax.ShapeDtypeStruct((b_pad, n_pad, out_pad), jnp.float32),
        grid=(b_pad // block_b,),
        in_specs=in_specs,
        out_specs=_batched((block_b, n_pad, out_pad)),
        compiler_params=pltpu.CompilerParams(
            dimension_semantics=("parallel",),   # shard steps across v7x's 2 TCs
            vmem_limit_bytes=vmem_limit,
        ),
    )(x, adj, mask, *weight_args)

    return out[:B, :N, :dout]


# -----------------------------------------------------------------------------
# Deterministic parameter construction (shapes follow the torch module __init__)
# -----------------------------------------------------------------------------
def make_params(key, din, dhid, dout):
    def nrm(k, shape, scale=0.1):
        return scale * jax.random.normal(k, shape, dtype=jnp.float32)

    keys = jax.random.split(key, 32)
    ki = iter(keys)
    p = {}

    def sage_layer(pref, fi, fo):
        # torch Linear weight is (out, in); we store the transposed (in, out) form.
        p[f"wrel{pref}"] = nrm(next(ki), (fi, fo))
        p[f"brel{pref}"] = nrm(next(ki), (1, fo))
        p[f"wroot{pref}"] = nrm(next(ki), (fi, fo))

    sage_layer(1, din, dhid)
    sage_layer(2, dhid, dhid)
    sage_layer(3, dhid, dout)

    def bn_layer(pref, c):
        gamma = 1.0 + nrm(next(ki), (1, c))
        beta = nrm(next(ki), (1, c))
        r_mean = nrm(next(ki), (1, c))
        r_var = 1.0 + 0.1 * jnp.abs(jax.random.normal(next(ki), (1, c), jnp.float32))
        eps = 1e-5
        scale = gamma / jnp.sqrt(r_var + eps)
        shift = beta - r_mean * scale
        p[f"bn{pref}s"] = scale
        p[f"bn{pref}b"] = shift

    bn_layer(1, dhid)
    bn_layer(2, dhid)
    bn_layer(3, dout)

    p["wlin"] = nrm(next(ki), (2 * dhid + dout, dout))
    p["blin"] = nrm(next(ki), (1, dout))
    return p


# -----------------------------------------------------------------------------
# Pure-JAX reference (f32 everywhere, exact divides)
# -----------------------------------------------------------------------------
def ref_forward(x, adj, mask, p):
    deg = jnp.maximum(adj.sum(-1, keepdims=True), 1.0)

    def sage(x_in, wr, br, wo, s, t):
        agg = jnp.einsum("bij,bjf->bif", adj, x_in) / deg
        h = agg @ wr + br + x_in @ wo
        nrm = jnp.sqrt(jnp.sum(h * h, -1, keepdims=True))
        h = h / jnp.maximum(nrm, 1e-12)
        h = h * mask
        h = h * s + t
        return jnp.maximum(h, 0.0)

    x1 = sage(x, p["wrel1"], p["brel1"], p["wroot1"], p["bn1s"], p["bn1b"])
    x2 = sage(x1, p["wrel2"], p["brel2"], p["wroot2"], p["bn2s"], p["bn2b"])
    x3 = sage(x2, p["wrel3"], p["brel3"], p["wroot3"], p["bn3s"], p["bn3b"])
    xc = jnp.concatenate([x1, x2, x3], axis=-1)
    return jnp.maximum(xc @ p["wlin"] + p["blin"], 0.0)


if __name__ == "__main__":
    B, N = 8, 16
    din, dhid, dout = 8, 32, 16

    key = jax.random.PRNGKey(0)
    k_x, k_adj, k_v, k_p = jax.random.split(key, 4)

    x = jax.random.normal(k_x, (B, N, din), dtype=jnp.float32)

    # symmetric random 0/1 adjacency; stored bf16 end-to-end (exact for 0/1) so
    # the kernel never pays an extra HBM pass for a cast.
    a = (jax.random.uniform(k_adj, (B, N, N)) > 0.5).astype(jnp.float32)
    adj_f32 = jnp.maximum(a, jnp.swapaxes(a, -1, -2))
    adj = adj_f32.astype(jnp.bfloat16)

    # per-graph valid node counts -> (B, N, 1) mask
    valid = jax.random.randint(k_v, (B,), 6, N + 1)
    mask = (jnp.arange(N)[None, :] < valid[:, None]).astype(jnp.float32)[..., None]

    params = make_params(k_p, din, dhid, dout)

    # block_b=4 -> grid=(2,): amortizes per-step overhead and keeps an even,
    # parallel grid for v7x's two TensorCores.
    out = dense_sage_gnn(x, adj, mask, params, block_b=4)
    out = jax.block_until_ready(out)

    expected = ref_forward(x, adj_f32, mask, params)
    np.testing.assert_allclose(np.asarray(out), np.asarray(expected), rtol=2e-2, atol=2e-2)
    assert out.shape == (B, N, dout)
    assert np.all(np.isfinite(np.asarray(out)))

    print("KERNEL_OK")
</pallas_src>

<mosaic_0001>
module attributes {stable_mosaic.version = 11 : i64} {
  func.func @_dense_sage_gnn_kernel(%arg0: i32, %arg1: memref<4x16x9xf32, #tpu.memory_space<vmem>>, %arg2: memref<4x16x16xbf16, #tpu.memory_space<vmem>>, %arg3: memref<4x16x1xf32, #tpu.memory_space<vmem>>, %arg4: memref<9x32xf32, #tpu.memory_space<vmem>>, %arg5: memref<1x32xf32, #tpu.memory_space<vmem>>, %arg6: memref<9x32xf32, #tpu.memory_space<vmem>>, %arg7: memref<32x32xf32, #tpu.memory_space<vmem>>, %arg8: memref<1x32xf32, #tpu.memory_space<vmem>>, %arg9: memref<32x32xf32, #tpu.memory_space<vmem>>, %arg10: memref<32x16xf32, #tpu.memory_space<vmem>>, %arg11: memref<1x16xf32, #tpu.memory_space<vmem>>, %arg12: memref<32x16xf32, #tpu.memory_space<vmem>>, %arg13: memref<1x32xf32, #tpu.memory_space<vmem>>, %arg14: memref<1x32xf32, #tpu.memory_space<vmem>>, %arg15: memref<1x32xf32, #tpu.memory_space<vmem>>, %arg16: memref<1x32xf32, #tpu.memory_space<vmem>>, %arg17: memref<1x16xf32, #tpu.memory_space<vmem>>, %arg18: memref<1x16xf32, #tpu.memory_space<vmem>>, %arg19: memref<32x128xf32, #tpu.memory_space<vmem>>, %arg20: memref<32x128xf32, #tpu.memory_space<vmem>>, %arg21: memref<16x128xf32, #tpu.memory_space<vmem>>, %arg22: memref<1x128xf32, #tpu.memory_space<vmem>>, %arg23: memref<4x16x128xf32, #tpu.memory_space<vmem>>) attributes {dimension_semantics = [#tpu.dimension_semantics<parallel>], iteration_bounds = array<i64: 2>, scalar_prefetch = 0 : i64, scratch_operands = 0 : i64, tpu.core_type = #tpu.core_type<tc>, window_params = [{transform_indices = @transform_0, window_bounds = array<i64: 4, 16, 9>}, {transform_indices = @transform_1, window_bounds = array<i64: 4, 16, 16>}, {transform_indices = @transform_2, window_bounds = array<i64: 4, 16, 1>}, {pipeline_mode = #tpu.pipeline_mode<synchronous>, transform_indices = @transform_3, window_bounds = array<i64: 9, 32>}, {pipeline_mode = #tpu.pipeline_mode<synchronous>, transform_indices = @transform_4, window_bounds = array<i64: 1, 32>}, {pipeline_mode = #tpu.pipeline_mode<synchronous>, transform_indices = @transform_5, window_bounds = array<i64: 9, 32>}, {pipeline_mode = #tpu.pipeline_mode<synchronous>, transform_indices = @transform_6, window_bounds = array<i64: 32, 32>}, {pipeline_mode = #tpu.pipeline_mode<synchronous>, transform_indices = @transform_7, window_bounds = array<i64: 1, 32>}, {pipeline_mode = #tpu.pipeline_mode<synchronous>, transform_indices = @transform_8, window_bounds = array<i64: 32, 32>}, {pipeline_mode = #tpu.pipeline_mode<synchronous>, transform_indices = @transform_9, window_bounds = array<i64: 32, 16>}, {pipeline_mode = #tpu.pipeline_mode<synchronous>, transform_indices = @transform_10, window_bounds = array<i64: 1, 16>}, {pipeline_mode = #tpu.pipeline_mode<synchronous>, transform_indices = @transform_11, window_bounds = array<i64: 32, 16>}, {pipeline_mode = #tpu.pipeline_mode<synchronous>, transform_indices = @transform_12, window_bounds = array<i64: 1, 32>}, {pipeline_mode = #tpu.pipeline_mode<synchronous>, transform_indices = @transform_13, window_bounds = array<i64: 1, 32>}, {pipeline_mode = #tpu.pipeline_mode<synchronous>, transform_indices = @transform_14, window_bounds = array<i64: 1, 32>}, {pipeline_mode = #tpu.pipeline_mode<synchronous>, transform_indices = @transform_15, window_bounds = array<i64: 1, 32>}, {pipeline_mode = #tpu.pipeline_mode<synchronous>, transform_indices = @transform_16, window_bounds = array<i64: 1, 16>}, {pipeline_mode = #tpu.pipeline_mode<synchronous>, transform_indices = @transform_17, window_bounds = array<i64: 1, 16>}, {pipeline_mode = #tpu.pipeline_mode<synchronous>, transform_indices = @transform_18, window_bounds = array<i64: 32, 128>}, {pipeline_mode = #tpu.pipeline_mode<synchronous>, transform_indices = @transform_19, window_bounds = array<i64: 32, 128>}, {pipeline_mode = #tpu.pipeline_mode<synchronous>, transform_indices = @transform_20, window_bounds = array<i64: 16, 128>}, {pipeline_mode = #tpu.pipeline_mode<synchronous>, transform_indices = @transform_21, window_bounds = array<i64: 1, 128>}, {transform_indices = @transform_22, window_bounds = array<i64: 4, 16, 128>}]} {
    %c0 = arith.constant 0 : index
    %c0_0 = arith.constant 0 : index
    %c0_1 = arith.constant 0 : index
    %0 = vector.load %arg2[%c0, %c0_0, %c0_1] : memref<4x16x16xbf16, #tpu.memory_space<vmem>>, vector<4x16x16xbf16>
    %c0_2 = arith.constant 0 : index
    %c0_3 = arith.constant 0 : index
    %c0_4 = arith.constant 0 : index
    %1 = vector.load %arg3[%c0_2, %c0_3, %c0_4] : memref<4x16x1xf32, #tpu.memory_space<vmem>>, vector<4x16x1xf32>
    %2 = vector.shape_cast %1 : vector<4x16x1xf32> to vector<64x1xf32>
    %c0_5 = arith.constant 0 : index
    %c0_6 = arith.constant 0 : index
    %c0_7 = arith.constant 0 : index
    %3 = vector.load %arg1[%c0_5, %c0_6, %c0_7] : memref<4x16x9xf32, #tpu.memory_space<vmem>>, vector<4x16x9xf32>
    %4 = arith.truncf %3 : vector<4x16x9xf32> to vector<4x16x9xbf16>
    "tpu.trace_start"() <{level = 10 : i32, message = "bij,bjf->bif"}> : () -> ()
    %cst = arith.constant dense<0.000000e+00> : vector<4x16x9xf32>
    %5 = tpu.matmul %0, %4, %cst {dimension_numbers = #tpu.dot_dimension_numbers<[2], [1], [1], [2], [0, 0, 0, 1, 1, 2], [0], [0]>} : vector<4x16x16xbf16>, vector<4x16x9xbf16>, vector<4x16x9xf32> -> vector<4x16x9xf32>
    "tpu.trace_stop"() : () -> ()
    %6 = vector.extract_strided_slice %5 {offsets = [0, 0, 8], sizes = [4, 16, 1], strides = [1, 1, 1]} : vector<4x16x9xf32> to vector<4x16x1xf32>
    %cst_8 = arith.constant 1.000000e+00 : f32
    %7 = vector.broadcast %cst_8 : f32 to vector<4x16x1xf32>
    %8 = arith.maximumf %6, %7 : vector<4x16x1xf32>
    %9 = tpu.reciprocal %8 {approx = true} : vector<4x16x1xf32> -> vector<4x16x1xf32>
    %10 = vector.shape_cast %3 : vector<4x16x9xf32> to vector<64x9xf32>
    %11 = vector.broadcast %9 : vector<4x16x1xf32> to vector<4x16x9xf32>
    %12 = arith.mulf %5, %11 : vector<4x16x9xf32>
    %13 = vector.shape_cast %12 : vector<4x16x9xf32> to vector<64x9xf32>
    %c0_9 = arith.constant 0 : index
    %c0_10 = arith.constant 0 : index
    %14 = vector.load %arg4[%c0_9, %c0_10] : memref<9x32xf32, #tpu.memory_space<vmem>>, vector<9x32xf32>
    %cst_11 = arith.constant dense<0.000000e+00> : vector<64x32xf32>
    %15 = tpu.matmul %13, %14, %cst_11 {dimension_numbers = #tpu.dot_dimension_numbers<[1], [0], [0], [1], [0, 0, 1, 1], [], []>} : vector<64x9xf32>, vector<9x32xf32>, vector<64x32xf32> -> vector<64x32xf32>
    %c0_12 = arith.constant 0 : index
    %c0_13 = arith.constant 0 : index
    %16 = vector.load %arg6[%c0_12, %c0_13] : memref<9x32xf32, #tpu.memory_space<vmem>>, vector<9x32xf32>
    %cst_14 = arith.constant dense<0.000000e+00> : vector<64x32xf32>
    %17 = tpu.matmul %10, %16, %cst_14 {dimension_numbers = #tpu.dot_dimension_numbers<[1], [0], [0], [1], [0, 0, 1, 1], [], []>} : vector<64x9xf32>, vector<9x32xf32>, vector<64x32xf32> -> vector<64x32xf32>
    %18 = arith.addf %15, %17 : vector<64x32xf32>
    %c0_15 = arith.constant 0 : index
    %c0_16 = arith.constant 0 : index
    %19 = vector.load %arg5[%c0_15, %c0_16] : memref<1x32xf32, #tpu.memory_space<vmem>>, vector<1x32xf32>
    %20 = vector.broadcast %19 : vector<1x32xf32> to vector<64x32xf32>
    %21 = arith.addf %18, %20 : vector<64x32xf32>
    %22 = arith.mulf %21, %21 : vector<64x32xf32>
    %cst_17 = arith.constant dense<0.000000e+00> : vector<64xf32>
    %23 = vector.multi_reduction <add>, %22, %cst_17 [1] : vector<64x32xf32> to vector<64xf32>
    %24 = vector.shape_cast %23 : vector<64xf32> to vector<64x1xf32>
    %cst_18 = arith.constant 1.000000e-24 : f32
    %25 = vector.broadcast %cst_18 : f32 to vector<64x1xf32>
    %26 = arith.maximumf %24, %25 : vector<64x1xf32>
    %27 = math.rsqrt %26 : vector<64x1xf32>
    %28 = arith.mulf %27, %2 : vector<64x1xf32>
    %29 = vector.broadcast %28 : vector<64x1xf32> to vector<64x32xf32>
    %30 = arith.mulf %21, %29 : vector<64x32xf32>
    %c0_19 = arith.constant 0 : index
    %c0_20 = arith.constant 0 : index
    %31 = vector.load %arg13[%c0_19, %c0_20] : memref<1x32xf32, #tpu.memory_space<vmem>>, vector<1x32xf32>
    %32 = vector.broadcast %31 : vector<1x32xf32> to vector<64x32xf32>
    %33 = arith.mulf %30, %32 : vector<64x32xf32>
    %c0_21 = arith.constant 0 : index
    %c0_22 = arith.constant 0 : index
    %34 = vector.load %arg14[%c0_21, %c0_22] : memref<1x32xf32, #tpu.memory_space<vmem>>, vector<1x32xf32>
    %35 = vector.broadcast %34 : vector<1x32xf32> to vector<64x32xf32>
    %36 = arith.addf %33, %35 : vector<64x32xf32>
    %cst_23 = arith.constant 0.000000e+00 : f32
    %37 = vector.broadcast %cst_23 : f32 to vector<64x32xf32>
    %38 = arith.maximumf %36, %37 : vector<64x32xf32>
    %39 = vector.shape_cast %38 : vector<64x32xf32> to vector<4x16x32xf32>
    %40 = arith.truncf %39 : vector<4x16x32xf32> to vector<4x16x32xbf16>
    %c0_24 = arith.constant 0 : index
    %c0_25 = arith.constant 0 : index
    %41 = vector.load %arg19[%c0_24, %c0_25] : memref<32x128xf32, #tpu.memory_space<vmem>>, vector<32x128xf32>
    %cst_26 = arith.constant dense<0.000000e+00> : vector<64x128xf32>
    %42 = tpu.matmul %38, %41, %cst_26 {dimension_numbers = #tpu.dot_dimension_numbers<[1], [0], [0], [1], [0, 0, 1, 1], [], []>} : vector<64x32xf32>, vector<32x128xf32>, vector<64x128xf32> -> vector<64x128xf32>
    %c0_27 = arith.constant 0 : index
    %c0_28 = arith.constant 0 : index
    %43 = vector.load %arg22[%c0_27, %c0_28] : memref<1x128xf32, #tpu.memory_space<vmem>>, vector<1x128xf32>
    %44 = vector.broadcast %43 : vector<1x128xf32> to vector<64x128xf32>
    %45 = arith.addf %42, %44 : vector<64x128xf32>
    "tpu.trace_start"() <{level = 10 : i32, message = "bij,bjf->bif"}> : () -> ()
    %cst_29 = arith.constant dense<0.000000e+00> : vector<4x16x32xf32>
    %46 = tpu.matmul %0, %40, %cst_29 {dimension_numbers = #tpu.dot_dimension_numbers<[2], [1], [1], [2], [0, 0, 0, 1, 1, 2], [0], [0]>} : vector<4x16x16xbf16>, vector<4x16x32xbf16>, vector<4x16x32xf32> -> vector<4x16x32xf32>
    "tpu.trace_stop"() : () -> ()
    %47 = vector.broadcast %9 : vector<4x16x1xf32> to vector<4x16x32xf32>
    %48 = arith.mulf %46, %47 : vector<4x16x32xf32>
    %49 = vector.shape_cast %48 : vector<4x16x32xf32> to vector<64x32xf32>
    %c0_30 = arith.constant 0 : index
    %c0_31 = arith.constant 0 : index
    %50 = vector.load %arg7[%c0_30, %c0_31] : memref<32x32xf32, #tpu.memory_space<vmem>>, vector<32x32xf32>
    %cst_32 = arith.constant dense<0.000000e+00> : vector<64x32xf32>
    %51 = tpu.matmul %49, %50, %cst_32 {dimension_numbers = #tpu.dot_dimension_numbers<[1], [0], [0], [1], [0, 0, 1, 1], [], []>} : vector<64x32xf32>, vector<32x32xf32>, vector<64x32xf32> -> vector<64x32xf32>
    %c0_33 = arith.constant 0 : index
    %c0_34 = arith.constant 0 : index
    %52 = vector.load %arg9[%c0_33, %c0_34] : memref<32x32xf32, #tpu.memory_space<vmem>>, vector<32x32xf32>
    %cst_35 = arith.constant dense<0.000000e+00> : vector<64x32xf32>
    %53 = tpu.matmul %38, %52, %cst_35 {dimension_numbers = #tpu.dot_dimension_numbers<[1], [0], [0], [1], [0, 0, 1, 1], [], []>} : vector<64x32xf32>, vector<32x32xf32>, vector<64x32xf32> -> vector<64x32xf32>
    %54 = arith.addf %51, %53 : vector<64x32xf32>
    %c0_36 = arith.constant 0 : index
    %c0_37 = arith.constant 0 : index
    %55 = vector.load %arg8[%c0_36, %c0_37] : memref<1x32xf32, #tpu.memory_space<vmem>>, vector<1x32xf32>
    %56 = vector.broadcast %55 : vector<1x32xf32> to vector<64x32xf32>
    %57 = arith.addf %54, %56 : vector<64x32xf32>
    %58 = arith.mulf %57, %57 : vector<64x32xf32>
    %cst_38 = arith.constant dense<0.000000e+00> : vector<64xf32>
    %59 = vector.multi_reduction <add>, %58, %cst_38 [1] : vector<64x32xf32> to vector<64xf32>
    %60 = vector.shape_cast %59 : vector<64xf32> to vector<64x1xf32>
    %cst_39 = arith.constant 1.000000e-24 : f32
    %61 = vector.broadcast %cst_39 : f32 to vector<64x1xf32>
    %62 = arith.maximumf %60, %61 : vector<64x1xf32>
    %63 = math.rsqrt %62 : vector<64x1xf32>
    %64 = arith.mulf %63, %2 : vector<64x1xf32>
    %65 = vector.broadcast %64 : vector<64x1xf32> to vector<64x32xf32>
    %66 = arith.mulf %57, %65 : vector<64x32xf32>
    %c0_40 = arith.constant 0 : index
    %c0_41 = arith.constant 0 : index
    %67 = vector.load %arg15[%c0_40, %c0_41] : memref<1x32xf32, #tpu.memory_space<vmem>>, vector<1x32xf32>
    %68 = vector.broadcast %67 : vector<1x32xf32> to vector<64x32xf32>
    %69 = arith.mulf %66, %68 : vector<64x32xf32>
    %c0_42 = arith.constant 0 : index
    %c0_43 = arith.constant 0 : index
    %70 = vector.load %arg16[%c0_42, %c0_43] : memref<1x32xf32, #tpu.memory_space<vmem>>, vector<1x32xf32>
    %71 = vector.broadcast %70 : vector<1x32xf32> to vector<64x32xf32>
    %72 = arith.addf %69, %71 : vector<64x32xf32>
    %cst_44 = arith.constant 0.000000e+00 : f32
    %73 = vector.broadcast %cst_44 : f32 to vector<64x32xf32>
    %74 = arith.maximumf %72, %73 : vector<64x32xf32>
    %75 = vector.shape_cast %74 : vector<64x32xf32> to vector<4x16x32xf32>
    %76 = arith.truncf %75 : vector<4x16x32xf32> to vector<4x16x32xbf16>
    %c0_45 = arith.constant 0 : index
    %c0_46 = arith.constant 0 : index
    %77 = vector.load %arg20[%c0_45, %c0_46] : memref<32x128xf32, #tpu.memory_space<vmem>>, vector<32x128xf32>
    %cst_47 = arith.constant dense<0.000000e+00> : vector<64x128xf32>
    %78 = tpu.matmul %74, %77, %cst_47 {dimension_numbers = #tpu.dot_dimension_numbers<[1], [0], [0], [1], [0, 0, 1, 1], [], []>} : vector<64x32xf32>, vector<32x128xf32>, vector<64x128xf32> -> vector<64x128xf32>
    %79 = arith.addf %45, %78 : vector<64x128xf32>
    "tpu.trace_start"() <{level = 10 : i32, message = "bij,bjf->bif"}> : () -> ()
    %cst_48 = arith.constant dense<0.000000e+00> : vector<4x16x32xf32>
    %80 = tpu.matmul %0, %76, %cst_48 {dimension_numbers = #tpu.dot_dimension_numbers<[2], [1], [1], [2], [0, 0, 0, 1, 1, 2], [0], [0]>} : vector<4x16x16xbf16>, vector<4x16x32xbf16>, vector<4x16x32xf32> -> vector<4x16x32xf32>
    "tpu.trace_stop"() : () -> ()
    %81 = vector.broadcast %9 : vector<4x16x1xf32> to vector<4x16x32xf32>
    %82 = arith.mulf %80, %81 : vector<4x16x32xf32>
    %83 = vector.shape_cast %82 : vector<4x16x32xf32> to vector<64x32xf32>
    %c0_49 = arith.constant 0 : index
    %c0_50 = arith.constant 0 : index
    %84 = vector.load %arg10[%c0_49, %c0_50] : memref<32x16xf32, #tpu.memory_space<vmem>>, vector<32x16xf32>
    %cst_51 = arith.constant dense<0.000000e+00> : vector<64x16xf32>
    %85 = tpu.matmul %83, %84, %cst_51 {dimension_numbers = #tpu.dot_dimension_numbers<[1], [0], [0], [1], [0, 0, 1, 1], [], []>} : vector<64x32xf32>, vector<32x16xf32>, vector<64x16xf32> -> vector<64x16xf32>
    %c0_52 = arith.constant 0 : index
    %c0_53 = arith.constant 0 : index
    %86 = vector.load %arg12[%c0_52, %c0_53] : memref<32x16xf32, #tpu.memory_space<vmem>>, vector<32x16xf32>
    %cst_54 = arith.constant dense<0.000000e+00> : vector<64x16xf32>
    %87 = tpu.matmul %74, %86, %cst_54 {dimension_numbers = #tpu.dot_dimension_numbers<[1], [0], [0], [1], [0, 0, 1, 1], [], []>} : vector<64x32xf32>, vector<32x16xf32>, vector<64x16xf32> -> vector<64x16xf32>
    %88 = arith.addf %85, %87 : vector<64x16xf32>
    %c0_55 = arith.constant 0 : index
    %c0_56 = arith.constant 0 : index
    %89 = vector.load %arg11[%c0_55, %c0_56] : memref<1x16xf32, #tpu.memory_space<vmem>>, vector<1x16xf32>
    %90 = vector.broadcast %89 : vector<1x16xf32> to vector<64x16xf32>
    %91 = arith.addf %88, %90 : vector<64x16xf32>
    %92 = arith.mulf %91, %91 : vector<64x16xf32>
    %cst_57 = arith.constant dense<0.000000e+00> : vector<64xf32>
    %93 = vector.multi_reduction <add>, %92, %cst_57 [1] : vector<64x16xf32> to vector<64xf32>
    %94 = vector.shape_cast %93 : vector<64xf32> to vector<64x1xf32>
    %cst_58 = arith.constant 1.000000e-24 : f32
    %95 = vector.broadcast %cst_58 : f32 to vector<64x1xf32>
    %96 = arith.maximumf %94, %95 : vector<64x1xf32>
    %97 = math.rsqrt %96 : vector<64x1xf32>
    %98 = arith.mulf %97, %2 : vector<64x1xf32>
    %99 = vector.broadcast %98 : vector<64x1xf32> to vector<64x16xf32>
    %100 = arith.mulf %91, %99 : vector<64x16xf32>
    %c0_59 = arith.constant 0 : index
    %c0_60 = arith.constant 0 : index
    %101 = vector.load %arg17[%c0_59, %c0_60] : memref<1x16xf32, #tpu.memory_space<vmem>>, vector<1x16xf32>
    %102 = vector.broadcast %101 : vector<1x16xf32> to vector<64x16xf32>
    %103 = arith.mulf %100, %102 : vector<64x16xf32>
    %c0_61 = arith.constant 0 : index
    %c0_62 = arith.constant 0 : index
    %104 = vector.load %arg18[%c0_61, %c0_62] : memref<1x16xf32, #tpu.memory_space<vmem>>, vector<1x16xf32>
    %105 = vector.broadcast %104 : vector<1x16xf32> to vector<64x16xf32>
    %106 = arith.addf %103, %105 : vector<64x16xf32>
    %cst_63 = arith.constant 0.000000e+00 : f32
    %107 = vector.broadcast %cst_63 : f32 to vector<64x16xf32>
    %108 = arith.maximumf %106, %107 : vector<64x16xf32>
    %c0_64 = arith.constant 0 : index
    %c0_65 = arith.constant 0 : index
    %109 = vector.load %arg21[%c0_64, %c0_65] : memref<16x128xf32, #tpu.memory_space<vmem>>, vector<16x128xf32>
    %cst_66 = arith.constant dense<0.000000e+00> : vector<64x128xf32>
    %110 = tpu.matmul %108, %109, %cst_66 {dimension_numbers = #tpu.dot_dimension_numbers<[1], [0], [0], [1], [0, 0, 1, 1], [], []>} : vector<64x16xf32>, vector<16x128xf32>, vector<64x128xf32> -> vector<64x128xf32>
    %111 = arith.addf %79, %110 : vector<64x128xf32>
    %cst_67 = arith.constant 0.000000e+00 : f32
    %112 = vector.broadcast %cst_67 : f32 to vector<64x128xf32>
    %113 = arith.maximumf %111, %112 : vector<64x128xf32>
    %114 = vector.shape_cast %113 : vector<64x128xf32> to vector<4x16x128xf32>
    %c0_68 = arith.constant 0 : index
    %c0_69 = arith.constant 0 : index
    %c0_70 = arith.constant 0 : index
    %115 = vector.load %arg23[%c0_68, %c0_69, %c0_70] : memref<4x16x128xf32, #tpu.memory_space<vmem>>, vector<4x16x128xf32>
    tpu.vector_store %arg23[%c0_68, %c0_69, %c0_70], %114 {strides = array<i32>} : memref<4x16x128xf32, #tpu.memory_space<vmem>>, vector<4x16x128xf32>,
    return
  }
  func.func @transform_0(%arg0: i32) -> (i32, i32, i32) {
    %c0_i32 = arith.constant 0 : i32
    %c0_i32_0 = arith.constant 0 : i32
    %c0_i32_1 = arith.constant 0 : i32
    return %arg0, %c0_i32, %c0_i32_0 : i32, i32, i32
  }
  func.func @transform_1(%arg0: i32) -> (i32, i32, i32) {
    %c0_i32 = arith.constant 0 : i32
    %c0_i32_0 = arith.constant 0 : i32
    %c0_i32_1 = arith.constant 0 : i32
    return %arg0, %c0_i32, %c0_i32_0 : i32, i32, i32
  }
  func.func @transform_2(%arg0: i32) -> (i32, i32, i32) {
    %c0_i32 = arith.constant 0 : i32
    %c0_i32_0 = arith.constant 0 : i32
    %c0_i32_1 = arith.constant 0 : i32
    return %arg0, %c0_i32, %c0_i32_0 : i32, i32, i32
  }
  func.func @transform_3(%arg0: i32) -> (i32, i32) {
    %c0_i32 = arith.constant 0 : i32
    %c0_i32_0 = arith.constant 0 : i32
    %c0_i32_1 = arith.constant 0 : i32
    return %c0_i32, %c0_i32_0 : i32, i32
  }
  func.func @transform_4(%arg0: i32) -> (i32, i32) {
    %c0_i32 = arith.constant 0 : i32
    %c0_i32_0 = arith.constant 0 : i32
    %c0_i32_1 = arith.constant 0 : i32
    return %c0_i32, %c0_i32_0 : i32, i32
  }
  func.func @transform_5(%arg0: i32) -> (i32, i32) {
    %c0_i32 = arith.constant 0 : i32
    %c0_i32_0 = arith.constant 0 : i32
    %c0_i32_1 = arith.constant 0 : i32
    return %c0_i32, %c0_i32_0 : i32, i32
  }
  func.func @transform_6(%arg0: i32) -> (i32, i32) {
    %c0_i32 = arith.constant 0 : i32
    %c0_i32_0 = arith.constant 0 : i32
    %c0_i32_1 = arith.constant 0 : i32
    return %c0_i32, %c0_i32_0 : i32, i32
  }
  func.func @transform_7(%arg0: i32) -> (i32, i32) {
    %c0_i32 = arith.constant 0 : i32
    %c0_i32_0 = arith.constant 0 : i32
    %c0_i32_1 = arith.constant 0 : i32
    return %c0_i32, %c0_i32_0 : i32, i32
  }
  func.func @transform_8(%arg0: i32) -> (i32, i32) {
    %c0_i32 = arith.constant 0 : i32
    %c0_i32_0 = arith.constant 0 : i32
    %c0_i32_1 = arith.constant 0 : i32
    return %c0_i32, %c0_i32_0 : i32, i32
  }
  func.func @transform_9(%arg0: i32) -> (i32, i32) {
    %c0_i32 = arith.constant 0 : i32
    %c0_i32_0 = arith.constant 0 : i32
    %c0_i32_1 = arith.constant 0 : i32
    return %c0_i32, %c0_i32_0 : i32, i32
  }
  func.func @transform_10(%arg0: i32) -> (i32, i32) {
    %c0_i32 = arith.constant 0 : i32
    %c0_i32_0 = arith.constant 0 : i32
    %c0_i32_1 = arith.constant 0 : i32
    return %c0_i32, %c0_i32_0 : i32, i32
  }
  func.func @transform_11(%arg0: i32) -> (i32, i32) {
    %c0_i32 = arith.constant 0 : i32
    %c0_i32_0 = arith.constant 0 : i32
    %c0_i32_1 = arith.constant 0 : i32
    return %c0_i32, %c0_i32_0 : i32, i32
  }
  func.func @transform_12(%arg0: i32) -> (i32, i32) {
    %c0_i32 = arith.constant 0 : i32
    %c0_i32_0 = arith.constant 0 : i32
    %c0_i32_1 = arith.constant 0 : i32
    return %c0_i32, %c0_i32_0 : i32, i32
  }
  func.func @transform_13(%arg0: i32) -> (i32, i32) {
    %c0_i32 = arith.constant 0 : i32
    %c0_i32_0 = arith.constant 0 : i32
    %c0_i32_1 = arith.constant 0 : i32
    return %c0_i32, %c0_i32_0 : i32, i32
  }
  func.func @transform_14(%arg0: i32) -> (i32, i32) {
    %c0_i32 = arith.constant 0 : i32
    %c0_i32_0 = arith.constant 0 : i32
    %c0_i32_1 = arith.constant 0 : i32
    return %c0_i32, %c0_i32_0 : i32, i32
  }
  func.func @transform_15(%arg0: i32) -> (i32, i32) {
    %c0_i32 = arith.constant 0 : i32
    %c0_i32_0 = arith.constant 0 : i32
    %c0_i32_1 = arith.constant 0 : i32
    return %c0_i32, %c0_i32_0 : i32, i32
  }
  func.func @transform_16(%arg0: i32) -> (i32, i32) {
    %c0_i32 = arith.constant 0 : i32
    %c0_i32_0 = arith.constant 0 : i32
    %c0_i32_1 = arith.constant 0 : i32
    return %c0_i32, %c0_i32_0 : i32, i32
  }
  func.func @transform_17(%arg0: i32) -> (i32, i32) {
    %c0_i32 = arith.constant 0 : i32
    %c0_i32_0 = arith.constant 0 : i32
    %c0_i32_1 = arith.constant 0 : i32
    return %c0_i32, %c0_i32_0 : i32, i32
  }
  func.func @transform_18(%arg0: i32) -> (i32, i32) {
    %c0_i32 = arith.constant 0 : i32
    %c0_i32_0 = arith.constant 0 : i32
    %c0_i32_1 = arith.constant 0 : i32
    return %c0_i32, %c0_i32_0 : i32, i32
  }
  func.func @transform_19(%arg0: i32) -> (i32, i32) {
    %c0_i32 = arith.constant 0 : i32
    %c0_i32_0 = arith.constant 0 : i32
    %c0_i32_1 = arith.constant 0 : i32
    return %c0_i32, %c0_i32_0 : i32, i32
  }
  func.func @transform_20(%arg0: i32) -> (i32, i32) {
    %c0_i32 = arith.constant 0 : i32
    %c0_i32_0 = arith.constant 0 : i32
    %c0_i32_1 = arith.constant 0 : i32
    return %c0_i32, %c0_i32_0 : i32, i32
  }
  func.func @transform_21(%arg0: i32) -> (i32, i32) {
    %c0_i32 = arith.constant 0 : i32
    %c0_i32_0 = arith.constant 0 : i32
    %c0_i32_1 = arith.constant 0 : i32
    return %c0_i32, %c0_i32_0 : i32, i32
  }
  func.func @transform_22(%arg0: i32) -> (i32, i32, i32) {
    %c0_i32 = arith.constant 0 : i32
    %c0_i32_0 = arith.constant 0 : i32
    %c0_i32_1 = arith.constant 0 : i32
    return %arg0, %c0_i32, %c0_i32_0 : i32, i32, i32
  }
}

</mosaic_0001>

<bundles_post_ra>
// kernel: tpu_custom_call.1
= control target key start
LH: loop header
LB: loop body
LE: loop exit
PB: predicated region body
PF: predicated region fallthrough
CT: control target
= control target key end

     0   :  { %s4680_s0 = inlined_call_operand.vmem [shape: f32[8,16,9], index: 0, kind: input, shape index: {}]   ;;  %s4681_s1 = inlined_call_operand.vmem [shape: bf16[8,16,16], index: 1, kind: input, shape index: {}]   ;;  %s4682_s2 = inlined_call_operand.vmem [shape: f32[8,16,1], index: 2, kind: input, shape index: {}]   ;;  %s4683_s3 = inlined_call_operand.vmem [shape: f32[9,32], index: 3, kind: input, shape index: {}]   ;;  %s4684_s4 = inlined_call_operand.vmem [shape: f32[1,32], index: 4, kind: input, shape index: {}]   ;;  %s4685_s5 = inlined_call_operand.vmem [shape: f32[9,32], index: 5, kind: input, shape index: {}]   ;;  %s4686_s6 = inlined_call_operand.vmem [shape: f32[32,32], index: 6, kind: input, shape index: {}]   ;;  %s4687_s7 = inlined_call_operand.vmem [shape: f32[1,32], index: 7, kind: input, shape index: {}]   ;;  %s4688_s8 = inlined_call_operand.vmem [shape: f32[32,32], index: 8, kind: input, shape index: {}]   ;;  %s4689_s9 = inlined_call_operand.vmem [shape: f32[32,16], index: 9, kind: input, shape index: {}]   ;;  %s4690_s10 = inlined_call_operand.vmem [shape: f32[1,16], index: 10, kind: input, shape index: {}]   ;;  %s4691_s11 = inlined_call_operand.vmem [shape: f32[32,16], index: 11, kind: input, shape index: {}]   ;;  %s4692_s12 = inlined_call_operand.vmem [shape: f32[1,32], index: 12, kind: input, shape index: {}]   ;;  %s4693_s13 = inlined_call_operand.vmem [shape: f32[1,32], index: 13, kind: input, shape index: {}]   ;;  %s4694_s14 = inlined_call_operand.vmem [shape: f32[1,32], index: 14, kind: input, shape index: {}]   ;;  %s4695_s15 = inlined_call_operand.vmem [shape: f32[1,32], index: 15, kind: input, shape index: {}]   ;;  %s4696_s16 = inlined_call_operand.vmem [shape: f32[1,16], index: 16, kind: input, shape index: {}]   ;;  %s4697_s17 = inlined_call_operand.vmem [shape: f32[1,16], index: 17, kind: input, shape index: {}]   ;;  %s4698_s18 = inlined_call_operand.vmem [shape: f32[32,128], index: 18, kind: input, shape index: {}]   ;;  %s4699_s19 = inlined_call_operand.vmem [shape: f32[32,128], index: 19, kind: input, shape index: {}]   ;;  %s4700_s20 = inlined_call_operand.vmem [shape: f32[16,128], index: 20, kind: input, shape index: {}]   ;;  %s4701_s21 = inlined_call_operand.vmem [shape: f32[1,128], index: 21, kind: input, shape index: {}]   ;;  %s4702_s22 = inlined_call_operand.hbm [shape: f32[8,16,128], index: 22, kind: output, shape index: {}]  }
   0x1   :  { %4714 = sst [smem:[#allocation11_spill]] %s4680_s0 }
   0x2   :  { %4715 = sst [smem:[#allocation12_spill]] %s4681_s1 }
   0x3   :  { %4716 = sst [smem:[#allocation13_spill]] %s4682_s2 }
   0x4   :  { %4717 = sst [smem:[#allocation14_spill]] %s4683_s3 }
   0x5   :  { %4718 = sst [smem:[#allocation15_spill]] %s4684_s4 }
   0x6   :  { %4719 = sst [smem:[#allocation16_spill]] %s4685_s5 }
   0x7   :  { %4720 = sst [smem:[#allocation17_spill]] %s4686_s6 }
   0x8   :  { %4721 = sst [smem:[#allocation18_spill]] %s4687_s7 }
   0x9   :  { %27 = vsyncpa [#allocation3], 0 }
   0xa   :  { %29 = vsyncpa [#allocation3 + $0x1], 0  ;;  %s4055_s3 = smov 0   ;;  %s4057_s28 = smov 0  }
   0xb   :  { %s4059_s29 = smov 0   ;;  %s4061_s30 = smov 0  }
   0xc LB: > { %4722 = sst [smem:[#allocation5_spill]] %s3918_s3  ;;  %s4076_s4 = sadd.s32 4294967295, %s3930_s30   ;;  %s3930_s30 = sphi %s4061_s30, %s4742_s30   ;;  %s3926_s29 = sphi %s4059_s29, %s4744_s29   ;;  %s3922_s28 = sphi %s4057_s28, %s4746_s28   ;;  %s3918_s3 = sphi %s4055_s3, %s4745_s3  }
   0xd   : > { %4723 = sst [smem:[#allocation6_spill]] %s3926_s29  ;;  %s3143_s0 = sadd.s32 4294967294, %s3930_s30  }
   0xe   : > { %4724 = sst [smem:[#allocation7_spill]] %s3930_s30  ;;  %s4080_s23 = sadd.s32 1, %s3930_s30  }
   0xf   : > { %4725 = sst [smem:[#allocation8_spill]] %s4080_s23  ;;  %s519_s1 = sadd.s32 1, %s3926_s29 }
  0x10   : > { %s516_s5 = ssub.s32 %s3930_s30, %s4080_s23  ;;  %p529_p0 = scmp.ne.s32.totalorder %s3926_s29, %s3922_s28 }
  0x11   : > { %p517_p1 = scmp.eq.s32.totalorder %s516_s5, 0  ;;  %p530_p2 = scmp.eq.s32.totalorder %s4076_s4, 1 }
  0x12   : > { %p535_p3 = scmp.ne.s32.totalorder %s3922_s28, %s3918_s3  ;;  %p536_p4 = scmp.eq.s32.totalorder %s3143_s0, 1 }
  0x13   : > { %s4091_s24 = scalar_select %p517_p1, %s3926_s29, %s519_s1  }
  0x14   : > { %p4093_p5 = por %p530_p2, %p529_p0  ;;  %p4097_p6 = por %p536_p4, %p535_p3 }
  0x15   : > { %4726 = sst [smem:[#allocation9_spill]] %s4091_s24  ;;  %p3146_p7 = scmp.ge.s32.totalorder %s3930_s30, 1 }
  0x16   : > { %s4728_s25 = scalar_select %p4097_p6, 1, 0 }
  0x17   : > { %p641_p8 = scmp.lt.s32.totalorder %s3930_s30, 3 }
  0x18   : > { %4729 = sst [smem:[#allocation10_spill]] %s4728_s25 }
  0x19   : > { %p642_p9 = pnand %p3146_p7, %p641_p8 }
  0x1a   : > { %s3148_s26 = sshll.u32 (!%p642_p9), %s4076_s4, 2  ;;  %v3932_v0 = vmov (!%p642_p9), 0.0   ;;  %vm3933_vm0 = vmmov (!%p642_p9), 0   ;;  %s4730_s5 = sld [smem:[#allocation11_spill]] (!%p642_p9)  ;;  %vm772_vm1 = vcmask (!%p642_p9), 130048   ;;  %v3934_v17 = vmov (!%p642_p9), 8  }
  0x1b   : > { %645 = sbr.rel (%p642_p9) target bundleno = 2679 (0xa77), region = 108  ;;  %3394 = vmatprep.subr.bf16.mxu1 (!%p642_p9), %v3932_v0  ;;  %p717_p10 = scmp.lt.s32.totalorder (!%p642_p9), %s3148_s26, 7  ;;  %3396 = vmatprep.mubr.msk.bf16.mxu1 (!%p642_p9), %vm3933_vm0, %v3932_v0  ;;  %vm1057_vm2 = vcmask (!%p642_p9), 1040384   ;;  %vm1032_vm3 = vcmask (!%p642_p9), 72704   ;;  %vm3935_vm4 = vmmov (!%p642_p9), 1   ;;  %vm1321_vm6 = vcmask (!%p642_p9), 261120  }
  0x1c   : > { %3406 = vmatprep.subr.bf16.mxu0 (!%p642_p9), %v3932_v0  ;;  %3408 = vmatprep.mubr.msk.bf16.mxu0 (!%p642_p9), %vm3933_vm0, %v3932_v0  ;;  %s4731_s25 = sld [smem:[#allocation12_spill]] (!%p642_p9)  ;;  %vm3635_vm5 = vmpackc.low (!%p642_p9), %vm1057_vm2, %vm3935_vm4  ;;  %s4734_s29 = sld [smem:[#allocation15_spill]] (!%p642_p9) }
  0x1d   : > { %3792 = vset.pattern.permute.xlu0 (!%p642_p9), %v3934_v17  ;;  %3793 = vset.pattern.permute.xlu1 (!%p642_p9), %v3934_v17  ;;  %s4736_s0 = sld [smem:[#allocation13_spill]] (!%p642_p9)  ;;  %s4738_s7 = sld [smem:[#allocation18_spill]] (!%p642_p9) }
  0x1e   : > { %s713_s30 = sand.u32 (!%p642_p9), 1, %s3922_s28  }
  0x22   : > { %s4748_s26 = smov (!%p717_p10, %s3148_s26), 7 }
  0x23   : > { %s4711_s2 = sshll.u32 %s4748_s26, 4  ;;  %s3264_s27 = sshll.u32 %s4748_s26, 3 }
  0x24   : > { %s721_s24 = scalar_lea.vmem %s4730_s5, %s4711_s2  ;;  %s4122_s3 = scalar_lea.vmem %s4731_s25, %s3264_s27 }
  0x25   : > { %v755_v1 = vld [vmem:[%s721_s24] sm:$0xff]  ;;  %v756_v2 = vld [vmem:[%s721_s24 + $0x8] sm:$0xff]  ;;  %v757_v5 = vld [vmem:[%s721_s24 + $0x10] sm:$0xff]  ;;  %s4733_s5 = sld [smem:[#allocation14_spill]]  ;;  %s4735_s23 = sshll.u32 %s4748_s26, 4 }
  0x26   : > { %v763_v3 = vpack.c.bf16 %v756_v2, %v755_v1  ;;  %v4125_v4 = vld [vmem:[%s4122_s3] sm:$0xff]   ;;  %v758_v6 = vld [vmem:[%s721_s24 + $0x18] sm:$0xff]  ;;  %v760_v8 = vld [vmem:[%s721_s24 + $0x28] sm:$0xff]  ;;  %s4253_s1 = scalar_lea.vmem %s4736_s0, %s4735_s23  ;;  %s4737_s23 = sld [smem:[#allocation17_spill]] }
  0x27   : > { %v759_v7 = vld [vmem:[%s721_s24 + $0x20] sm:$0xff]  ;;  %v764_v9 = vpack.c.bf16 %v758_v6, %v757_v5  ;;  %v4129_v11 = vld [vmem:[%s4122_s3 + $0x10] sm:$0xff]   ;;  %v762_v13 = vld [vmem:[%s721_s24 + $0x38] sm:$0xff]  ;;  %s3267_s27 = sshll.u32 %s4076_s4, 10  ;;  %s4639_s4 = scalar_lea.sflag [#allocation3], %s713_s30 }
  0x28   : > { %3395 = vmatpush3.bf16.msra.mxu1 %v763_v3  ;;  %v765_v10 = vpack.c.bf16 %v760_v8, %v759_v7  ;;  %v761_v12 = vld [vmem:[%s721_s24 + $0x30] sm:$0xff]  ;;  %v4139_v14 = vld [vmem:[%s4122_s3 + $0x8] sm:$0xff]   ;;  %v4146_v16 = vld [vmem:[%s4122_s3 + $0x18] sm:$0xff]   ;;  %s4732_s24 = sld [smem:[#allocation16_spill]]  ;;  %s4633_s2 = scalar_lea.hbm %s4702_s22, %s3267_s27 }
  0x29   : > { %3400 = vmatprep.subr.bf16.mxu1 %v3932_v0  ;;  %v766_v15 = vpack.c.bf16 %v762_v13, %v761_v12 }
  0x2a   : > { %3407 = vmatpush3.bf16.msra.mxu0 %v765_v10  ;;  %v3183_v10 = vld [vmem:[%s4734_s29] ss:$0 sm:$0xff] }
  0x2b   : > { %3397 = vmatmul.mubr.msk.bf16.vlgmr.msra.gmra.mrb[0].mxu1 %vm772_vm1, %v4125_v4  ;;  %v1028_v21 = vld [vmem:[%s4733_s5] sm:$0xff]  ;;  %v1029_v22 = vld [vmem:[%s4733_s5 + $0x8] sm:$0x1] }
  0x2c   : > { %3401 = vmatpush3.bf16.msra.mxu1 %v764_v9  ;;  %3402 = vmatprep.mubr.msk.bf16.mxu1 %vm3933_vm0, %v3932_v0  ;;  %v3640_v23 = vpack.c.bf16 %v1029_v22, %v1028_v21 }
  0x2d   : > { %3409 = vmatmul.mubr.msk.bf16.vlgmr.msra.gmra.mrb[0].mxu0 %vm772_vm1, %v4129_v11  ;;  %3412 = vmatprep.subr.bf16.mxu1 %v3932_v0 }
  0x2e   : > { %v1030_v18 = vld [vmem:[%s4732_s24] sm:$0xff]  ;;  %v1031_v19 = vld [vmem:[%s4732_s24 + $0x8] sm:$0x1]  ;;  %3422 = vmatprep.mubr.msk.f32.mxu0 %vm1032_vm3, %v755_v1 }
  0x2f   : > { %v3634_v20 = vpack.c.bf16 %v1031_v19, %v1030_v18 }
  0x31   : > { %3636 = vmatprep.subr.msk.bf16.mxu0 %vm3635_vm5, %v3634_v20 }
  0x32   : > { %3639 = vmatpush3.bf16.msk.msra.mxu0 %vm3635_vm5, %v3634_v20 }
  0x33   : > { %3403 = vmatmul.mubr.msk.bf16.vlgmr.msra.gmra.mrb[4].mxu1 %vm772_vm1, %v4139_v14  ;;  %3642 = vmatprep.subr.msk.bf16.mxu0 %vm3635_vm5, %v3640_v23 }
  0x34   : > { %3413 = vmatpush3.bf16.msra.mxu1 %v766_v15  ;;  %3414 = vmatprep.mubr.msk.bf16.mxu1 %vm3933_vm0, %v3932_v0 }
  0x35   : > { %3423 = vmatmul.mubr.msk.f32.vlgmr.msra.gmra.mrb[4].mxu0 %vm1032_vm3, %v756_v2 }
  0x36   : > { %3425 = vmatprep.mubr.msk.f32.mxu0 %vm1032_vm3, %v757_v5  ;;  %3645 = vmatpush3.bf16.msk.msra.mxu0 %vm3635_vm5, %v3640_v23 }
  0x37   : > { %3482 = vmatprep.subr.bf16.mxu0 %v3932_v0 }
  0x39   : > { %3426 = vmatmul.mubr.msk.f32.gmra.mrb[6].mxu0 %vm1032_vm3, %v758_v6 }
  0x3a   : > { %3428 = vmatprep.mubr.msk.f32.mxu0 %vm1032_vm3, %v759_v7 }
  0x3b   : > { %3415 = vmatmul.mubr.msk.bf16.vlgmr.msra.gmra.mrb[8].mxu1 %vm772_vm1, %v4146_v16 }
  0x3d   : > { %3429 = vmatmul.mubr.msk.f32.gmra.mrb[8].mxu0 %vm1032_vm3, %v760_v8 }
  0x3e   : > { %3431 = vmatprep.mubr.msk.f32.mxu0 %vm1032_vm3, %v761_v12 }
  0x41   : > { %3432 = vmatmul.mubr.msk.f32.gmra.mrb[10].mxu0 %vm1032_vm3, %v762_v13 }
  0xfe   : > { %v810_v24 = vpop.f32.mrb[0].mxu1 }
  0xff   : > { %v964_v25 = vmax.f32 %v810_v24, 1.0  ;;  %v3398_v26 = vpop.f32.mrb[1].mxu1 }
 0x100   : > { %v813_v27 = vpop.f32.mrb[2].mxu1  ;;  %v908_v28 = vpop.f32.mrb[0].mxu0 }
 0x101   : > { %3800 = vrcp.f32 %v964_v25  ;;  %v965_v29 = vmax.f32 %v813_v27, 1.0  ;;  %v3399_v30 = vpop.f32.mrb[3].mxu1  ;;  %v3410_v31 = vpop.f32.mrb[1].mxu0  ;;  %v968_v33 = vmax.f32 %v908_v28, 1.0 }
 0x102   : > { %v911_v32 = vpop.f32.mrb[2].mxu0 }
 0x103   : > { %v3411_v34 = vpop.f32.mrb[3].mxu0  ;;  %3802 = vrcp.f32 %v965_v29  ;;  %v969_v42 = vmax.f32 %v911_v32, 1.0 }
 0x104   : > { %3804 = vrcp.f32 %v968_v33 }
 0x106   : > { %v859_v35 = vpop.f32.mrb[4].mxu1 }
 0x107   : > { %v966_v36 = vmax.f32 %v859_v35, 1.0  ;;  %v3404_v37 = vpop.f32.mrb[5].mxu1 }
 0x108   : > { %v862_v38 = vpop.f32.mrb[6].mxu1 }
 0x109   : > { %3806 = vrcp.f32 %v966_v36  ;;  %v967_v39 = vmax.f32 %v862_v38, 1.0  ;;  %v3405_v40 = vpop.f32.mrb[7].mxu1 }
 0x10b   : > { %v3801_v41 = vpop.eup %3800  ;;  %3808 = vrcp.f32 %v967_v39 }
 0x10c   : > { %982 = vperm.xlu0 %3792, %v3801_v41   ;;  %3810 = vrcp.f32 %v969_v42 }
 0x10d   : > { %v3803_v44 = vpop.eup %3802 }
 0x10e   : > { %v957_v43 = vpop.f32.mrb[8].mxu1  ;;  %v3805_v48 = vpop.eup %3804 }
 0x10f   : > { %v970_v45 = vmax.f32 %v957_v43, 1.0  ;;  %v3416_v46 = vpop.f32.mrb[9].mxu1 }
 0x110   : > { %987 = vperm.xlu0 %3792, %v3803_v44   ;;  %v960_v47 = vpop.f32.mrb[10].mxu1  ;;  %v3936_v46 = vmov 0  }
 0x111   : > { %3812 = vrcp.f32 %v970_v45  ;;  %v971_v49 = vmax.f32 %v960_v47, 1.0  ;;  %v3417_v50 = vpop.f32.mrb[11].mxu1 }
 0x113   : > { %v3807_v51 = vpop.eup %3806  ;;  %3814 = vrcp.f32 %v971_v49 }
 0x114   : > { %1002 = vperm.xlu0 %3792, %v3805_v48   ;;  %992 = vperm.xlu1 %3793, %v3807_v51  }
 0x115   : > { %v3809_v52 = vpop.eup %3808 }
 0x116   : > { %v3811_v53 = vpop.eup %3810 }
 0x118   : > { %997 = vperm.xlu1 %3793, %v3809_v52   ;;  %v4256_v52 = vld [vmem:[%s4253_s1 + $0x8] sm:$0xff] }
 0x11b   : > { %v3813_v54 = vpop.eup %3812 }
 0x11c   : > { %1007 = vperm.xlu1 %3793, %v3811_v53   ;;  %1012 = vperm.xlu0 %3792, %v3813_v54   ;;  %v4259_v53 = vld [vmem:[%s4253_s1] sm:$0xff] }
 0x11d   : > { %v3815_v55 = vpop.eup %3814 }
 0x120   : > { %1017 = vperm.xlu1 %3793, %v3815_v55   ;;  %3794 = vset.pattern.permute.xlu0 %v3936_v46 }
 0x124   : > { %3795 = vset.pattern.permute.xlu1 %v3936_v46 }
 0x18b   : > { %v4171_v56 = vpop.permute.xlu0 %982 }
 0x18c   : > { %v1020_v57 = vmul.f32 %v4171_v56, %v810_v24 }
 0x18e   : > { %3438 = vmatprep.mubr.msk.f32.mxu0 %vm1032_vm3, %v1020_v57 }
 0x18f   : > { %v4175_v58 = vpop.permute.xlu0 %987 }
 0x190   : > { %v1021_v59 = vmul.f32 %v4175_v58, %v813_v27 }
 0x192   : > { %3439 = vmatmul.mubr.msk.f32.vlgmr.msra.gmra.mrb[4].mxu0 %vm1032_vm3, %v1021_v59 }
 0x193   : > { %v4179_v60 = vpop.permute.xlu1 %992  ;;  %v4182_v62 = vpop.permute.xlu0 %1002 }
 0x194   : > { %v1022_v61 = vmul.f32 %v4179_v60, %v859_v35  ;;  %v1024_v2 = vmul.f32 %v4182_v62, %v908_v28 }
 0x196   : > { %3441 = vmatprep.mubr.msk.f32.mxu0 %vm1032_vm3, %v1022_v61 }
 0x197   : > { %v4185_v63 = vpop.permute.xlu1 %997 }
 0x198   : > { %v1023_v1 = vmul.f32 %v4185_v63, %v862_v38 }
 0x19a   : > { %3442 = vmatmul.mubr.msk.f32.gmra.mrb[6].mxu0 %vm1032_vm3, %v1023_v1 }
 0x19b   : > { %3444 = vmatprep.mubr.msk.f32.mxu0 %vm1032_vm3, %v1024_v2  ;;  %v4191_v3 = vpop.permute.xlu1 %1007  ;;  %v4193_v5 = vpop.permute.xlu0 %1012 }
 0x19c   : > { %v1025_v6 = vmul.f32 %v4191_v3, %v911_v32  ;;  %v1026_v7 = vmul.f32 %v4193_v5, %v957_v43 }
 0x19e   : > { %3445 = vmatmul.mubr.msk.f32.gmra.mrb[8].mxu0 %vm1032_vm3, %v1025_v6  ;;  %v1460_v6 = vld [vmem:[%s4698_s18] sm:$0xff] }
 0x19f   : > { %3447 = vmatprep.mubr.msk.f32.mxu0 %vm1032_vm3, %v1026_v7  ;;  %v4199_v8 = vpop.permute.xlu1 %1017  ;;  %v1461_v7 = vld [vmem:[%s4698_s18 + $0x8] sm:$0xff] }
 0x1a0   : > { %v1027_v9 = vmul.f32 %v4199_v8, %v960_v47 }
 0x1a2   : > { %3448 = vmatmul.mubr.msk.f32.gmra.mrb[10].mxu0 %vm1032_vm3, %v1027_v9 }
 0x1a3   : > { %3484 = vmatprep.mubr.msk.bf16.mxu0 %vm3933_vm0, %v3932_v0 }
 0x265   : > { %v3440_v12 = vpop.f32.mrb[4].mxu0 }
 0x266   : > { %v4208_v13 = vadd.f32 %v3440_v12, %v3183_v10  ;;  %v1259_v15 = vpop.f32.mrb[5].mxu0  ;;  %v3646_v12 = vpack.c.bf16 %v1461_v7, %v1460_v6 }
 0x267   : > { %v4210_v17 = vadd.f32 %v3183_v10, %v1259_v15 }
 0x268   : > { %v1314_v18 = vmul.f32 %v4208_v13, %v4208_v13  ;;  %3647 = vmatprep.subr.bf16.mxu1 %v3646_v12 }
 0x269   : > { %v1313_v19 = vmul.f32 %v4210_v17, %v4210_v17  ;;  %3649 = vmatpush3.bf16.msra.mxu1 %v3646_v12 }
 0x26a   : > { %v1325_v20 = vsel %vm1321_vm6, %v1314_v18, 0.0  ;;  %v1462_v18 = vld [vmem:[%s4698_s18 + $0x10] sm:$0xff] }
 0x26b   : > { %1326 = vadd.xlane.f32.xlu1 %v1325_v20  ;;  %v1322_v21 = vsel %vm1321_vm6, %v1313_v19, 0.0  ;;  %v1463_v19 = vld [vmem:[%s4698_s18 + $0x18] sm:$0xff] }
 0x26c   : > { %1323 = vadd.xlane.f32.xlu0 %v1322_v21  ;;  %v3650_v20 = vpack.c.bf16 %v1463_v19, %v1462_v18 }
 0x26d   : > { %v3443_v22 = vpop.f32.mrb[6].mxu0 }
 0x26e   : > { %v4218_v23 = vadd.f32 %v3443_v22, %v3183_v10  ;;  %v1269_v24 = vpop.f32.mrb[7].mxu0  ;;  %3651 = vmatprep.subr.bf16.mxu1 %v3650_v20 }
 0x26f   : > { %v4220_v25 = vadd.f32 %v3183_v10, %v1269_v24  ;;  %v4276_v24 = vld [vmem:[%s4253_s1 + $0x18] sm:$0xff]  ;;  %3653 = vmatpush3.bf16.msra.mxu1 %v3650_v20 }
 0x270   : > { %v1316_v29 = vmul.f32 %v4218_v23, %v4218_v23  ;;  %3470 = vmatprep.subr.bf16.mxu1 %v3932_v0 }
 0x271   : > { %v3446_v26 = vpop.f32.mrb[8].mxu0  ;;  %v1315_v27 = vmul.f32 %v4220_v25, %v4220_v25 }
 0x272   : > { %v1279_v28 = vpop.f32.mrb[9].mxu0  ;;  %v4226_v30 = vadd.f32 %v3446_v26, %v3183_v10  ;;  %v1331_v36 = vsel %vm1321_vm6, %v1316_v29, 0.0 }
 0x273   : > { %v4228_v31 = vadd.f32 %v3183_v10, %v1279_v28  ;;  %v1328_v32 = vsel %vm1321_vm6, %v1315_v27, 0.0 }
 0x274   : > { %1329 = vadd.xlane.f32.xlu0 %v1328_v32  ;;  %v1318_v40 = vmul.f32 %v4226_v30, %v4226_v30 }
 0x275   : > { %v3449_v33 = vpop.f32.mrb[10].mxu0  ;;  %v1317_v34 = vmul.f32 %v4228_v31, %v4228_v31 }
 0x276   : > { %v1289_v35 = vpop.f32.mrb[11].mxu0  ;;  %v4234_v37 = vadd.f32 %v3449_v33, %v3183_v10  ;;  %v1337_v42 = vsel %vm1321_vm6, %v1318_v40, 0.0  ;;  %v4281_v33 = vld [vmem:[%s4253_s1 + $0x10] sm:$0xff] }
 0x277   : > { %v4236_v38 = vadd.f32 %v3183_v10, %v1289_v35  ;;  %v1334_v39 = vsel %vm1321_vm6, %v1317_v34, 0.0 }
 0x278   : > { %1332 = vadd.xlane.f32.xlu0 %v1331_v36  ;;  %1335 = vadd.xlane.f32.xlu1 %v1334_v39  ;;  %v1320_v44 = vmul.f32 %v4234_v37, %v4234_v37  ;;  %v4285_v39 = vld [vmem:[%s4253_s1 + $0x28] sm:$0xff] }
 0x279   : > { %v1319_v41 = vmul.f32 %v4236_v38, %v4236_v38 }
 0x27a   : > { %v1343_v45 = vsel %vm1321_vm6, %v1320_v44, 0.0 }
 0x27b   : > { %v1340_v43 = vsel %vm1321_vm6, %v1319_v41, 0.0 }
 0x27c   : > { %1338 = vadd.xlane.f32.xlu0 %v1337_v42  ;;  %1341 = vadd.xlane.f32.xlu1 %v1340_v43  ;;  %v4289_v42 = vld [vmem:[%s4253_s1 + $0x20] sm:$0xff] }
 0x280   : > { %1344 = vadd.xlane.f32.xlu0 %v1343_v45  ;;  %v4293_v45 = vld [vmem:[%s4253_s1 + $0x30] sm:$0xff] }
 0x2f8   : > { %v1327_v47 = vpop.xlane.xlu1 %1326 }
 0x2f9   : > { %v1347_v48 = vmax.f32 %v1327_v47, 1e-24  ;;  %v1324_v49 = vpop.xlane.xlu0 %1323 }
 0x2fa   : > { %v1346_v50 = vmax.f32 %v1324_v49, 1e-24 }
 0x2fb   : > { %3816 = vrsqrt.f32 %v1347_v48  ;;  %v4297_v48 = vld [vmem:[%s4253_s1 + $0x38] sm:$0xff]  ;;  %s3147_s1 = sshll.u32 %s713_s30, 6 }
 0x2fc   : > { %3818 = vrsqrt.f32 %v1346_v50  ;;  %v3184_v50 = vld [vmem:[%s4692_s12] ss:$0 sm:$0xff]  ;;  %s715_s25 = scalar_lea.vmem [#allocation2], %s3147_s1  ;;  %s3937_s1 = smov [#allocation2]  }
 0x2fd   : > { %s3057_s0 = sshll.u32 %s715_s25, 4  ;;  %s3872_s26 = sshll.u32 %s3937_s1, 4  ;;  %s4635_s0 = int_to_ptr.vmem [resolvable:$true] %s3057_s0  ;;  %s3873_s26 = int_to_ptr.vmem [resolvable:$false] %s3872_s26 }
 0x2fe   : > { %s3868_s29 = scalar_lea.vmem %s4635_s0, 1024  ;;  %s3874_s27 = scalar_lea.vmem %s3873_s26, 2048 }
 0x2ff   : > { %p3869_p11 = scmp.ne.s32.totalorder %s4635_s0, %s3868_s29  ;;  %p3875_p0 = scmp.lt.s32.totalorder %s4635_s0, %s3873_s26 }
 0x300   : > { %p3876_p1 = scmp.lt.s32.totalorder %s3874_s27, %s3868_s29 }
 0x301   : > { %v1330_v51 = vpop.xlane.xlu0 %1329  ;;  %p3870_p12 = pnand %p3869_p11, %p4093_p5 }
 0x302   : > { %v1348_v59 = vmax.f32 %v1330_v51, 1e-24  ;;  %p3877_p2 = por %p3876_p1, %p3875_p0 }
 0x303   : > { %p3871_p13 = pneg %p3870_p12 }
 0x305   : > { %v3817_v54 = vpop.eup %3816  ;;  %v1333_v55 = vpop.xlane.xlu0 %1332  ;;  %p3878_p3 = pnand %p3877_p2, %p3871_p13 }
 0x306   : > { %v3819_v57 = vpop.eup %3818  ;;  %v1349_v61 = vmax.f32 %v1333_v55, 1e-24  ;;  %v1363_v1 = vmul.f32 %v3817_v54, %v4256_v52  ;;  %v1336_v9 = vpop.xlane.xlu1 %1335 }
 0x307   : > { %v1362_v2 = vmul.f32 %v3819_v57, %v4259_v53  ;;  %v1350_v21 = vmax.f32 %v1336_v9, 1e-24  ;;  %v3185_v57 = vld [vmem:[%s4693_s13] ss:$0 sm:$0xff] }
 0x308   : > { %3820 = vrsqrt.f32 %v1349_v61  ;;  %1377 = vperm.xlu0 %3794, %v1363_v1  }
 0x309   : > { %v1339_v10 = vpop.xlane.xlu0 %1338  ;;  %1372 = vperm.xlu1 %3795, %v1362_v2   ;;  %3822 = vrsqrt.f32 %v1348_v59 }
 0x30a   : > { %v1351_v15 = vmax.f32 %v1339_v10, 1e-24  ;;  %v1342_v22 = vpop.xlane.xlu1 %1341 }
 0x30b   : > { %v1352_v27 = vmax.f32 %v1342_v22, 1e-24 }
 0x30c   : > { %3824 = vrsqrt.f32 %v1351_v15 }
 0x30d   : > { %3826 = vrsqrt.f32 %v1350_v21  ;;  %v1345_v28 = vpop.xlane.xlu0 %1344 }
 0x30e   : > { %3828 = vrsqrt.f32 %v1352_v27  ;;  %v1353_v34 = vmax.f32 %v1345_v28, 1e-24 }
 0x310   : > { %3830 = vrsqrt.f32 %v1353_v34 }
 0x312   : > { %v3821_v26 = vpop.eup %3820 }
 0x313   : > { %v1365_v29 = vmul.f32 %v3821_v26, %v4276_v24  ;;  %v3823_v32 = vpop.eup %3822 }
 0x314   : > { %v1364_v35 = vmul.f32 %v3823_v32, %v4281_v33 }
 0x315   : > { %1387 = vperm.xlu1 %3795, %v1365_v29  }
 0x316   : > { %v3825_v36 = vpop.eup %3824 }
 0x317   : > { %v1367_v40 = vmul.f32 %v3825_v36, %v4285_v39  ;;  %v3827_v41 = vpop.eup %3826 }
 0x318   : > { %v1366_v43 = vmul.f32 %v3827_v41, %v4289_v42  ;;  %v3829_v44 = vpop.eup %3828  ;;  %v1777_v41 = vld [vmem:[%s4688_s8 + $0x8] sm:$0xff] }
 0x319   : > { %1382 = vperm.xlu1 %3795, %v1364_v35   ;;  %v1368_v46 = vmul.f32 %v3829_v44, %v4293_v45 }
 0x31a   : > { %v3831_v47 = vpop.eup %3830 }
 0x31b   : > { %v1369_v49 = vmul.f32 %v3831_v47, %v4297_v48 }
 0x31d   : > { %1397 = vperm.xlu1 %3795, %v1367_v40  }
 0x321   : > { %1392 = vperm.xlu1 %3795, %v1366_v43  }
 0x325   : > { %1402 = vperm.xlu1 %3795, %v1368_v46  }
 0x329   : > { %1407 = vperm.xlu1 %3795, %v1369_v49  }
 0x387   : > { %v1378_v51 = vpop.permute.xlu0 %1377 }
 0x388   : > { %v1411_v54 = vmul.f32 %v1378_v51, %v4208_v13  ;;  %v1373_v55 = vpop.permute.xlu1 %1372 }
 0x389   : > { %v1410_v59 = vmul.f32 %v1373_v55, %v4210_v17  ;;  %v1779_v55 = vld [vmem:[%s4688_s8 + $0x18] sm:$0xff] }
 0x38a   : > { %v1426_v61 = vmul.f32 %v3184_v50, %v1411_v54 }
 0x38b   : > { %v1425_v1 = vmul.f32 %v3184_v50, %v1410_v59 }
 0x38c   : > { %v1441_v2 = vadd.f32 %v3185_v57, %v1426_v61 }
 0x38d   : > { %v1440_v6 = vadd.f32 %v3185_v57, %v1425_v1 }
 0x38e   : > { %v1449_v7 = vmax.f32 %v1441_v2, 0.0 }
 0x38f   : > { %v1448_v9 = vmax.f32 %v1440_v6, 0.0  ;;  %v1774_v6 = vld [vmem:[%s4737_s23 + $0x10] sm:$0xff] }
 0x391   : > { %3458 = vmatprep.mubr.msk.f32.mxu1 %vm1321_vm6, %v1448_v9  ;;  %v1456_v10 = vpack.c.bf16 %v1449_v7, %v1448_v9 }
 0x392   : > { %3459 = vmatmul.mubr.msk.f32.vlgmr.msra.gmra.mrb[12].mxu1 %vm1321_vm6, %v1449_v7 }
 0x393   : > { %3471 = vmatpush3.bf16.msra.mxu1 %v1456_v10 }
 0x394   : > { %v1388_v13 = vpop.permute.xlu1 %1387  ;;  %3476 = vmatprep.subr.bf16.mxu1 %v3932_v0 }
 0x395   : > { %v1413_v12 = vmul.f32 %v1388_v13, %v4218_v23 }
 0x397   : > { %v1428_v15 = vmul.f32 %v3184_v50, %v1413_v12 }
 0x398   : > { %v1383_v18 = vpop.permute.xlu1 %1382 }
 0x399   : > { %v1412_v17 = vmul.f32 %v1383_v18, %v4220_v25  ;;  %v1443_v20 = vadd.f32 %v3185_v57, %v1428_v15 }
 0x39b   : > { %v1427_v19 = vmul.f32 %v3184_v50, %v1412_v17  ;;  %v1451_v29 = vmax.f32 %v1443_v20, 0.0 }
 0x39c   : > { %v1398_v21 = vpop.permute.xlu1 %1397 }
 0x39d   : > { %v1442_v22 = vadd.f32 %v3185_v57, %v1427_v19  ;;  %v1415_v26 = vmul.f32 %v1398_v21, %v4226_v30  ;;  %v1776_v30 = vld [vmem:[%s4688_s8] sm:$0xff] }
 0x39e   : > { %v3654_v47 = vpack.c.bf16 %v1777_v41, %v1776_v30 }
 0x39f   : > { %v1450_v27 = vmax.f32 %v1442_v22, 0.0  ;;  %v1430_v28 = vmul.f32 %v3184_v50, %v1415_v26 }
 0x3a0   : > { %v1393_v32 = vpop.permute.xlu1 %1392 }
 0x3a1   : > { %v1414_v34 = vmul.f32 %v1393_v32, %v4228_v31  ;;  %3461 = vmatprep.mubr.msk.f32.mxu1 %vm1321_vm6, %v1450_v27  ;;  %v1445_v23 = vadd.f32 %v3185_v57, %v1430_v28 }
 0x3a2   : > { %3462 = vmatmul.mubr.msk.f32.gmra.mrb[14].mxu1 %vm1321_vm6, %v1451_v29 }
 0x3a3   : > { %v1429_v35 = vmul.f32 %v3184_v50, %v1414_v34  ;;  %v1453_v43 = vmax.f32 %v1445_v23, 0.0 }
 0x3a4   : > { %v1403_v36 = vpop.permute.xlu1 %1402 }
 0x3a5   : > { %v1444_v25 = vadd.f32 %v3185_v57, %v1429_v35  ;;  %v1416_v40 = vmul.f32 %v1403_v36, %v4236_v38  ;;  %v1778_v38 = vld [vmem:[%s4688_s8 + $0x10] sm:$0xff] }
 0x3a6   : > { %v3658_v1 = vpack.c.bf16 %v1779_v55, %v1778_v38 }
 0x3a7   : > { %v1452_v31 = vmax.f32 %v1444_v25, 0.0  ;;  %v1431_v44 = vmul.f32 %v3184_v50, %v1416_v40 }
 0x3a8   : > { %v1408_v46 = vpop.permute.xlu1 %1407 }
 0x3a9   : > { %v1446_v49 = vadd.f32 %v3185_v57, %v1431_v44  ;;  %v1417_v51 = vmul.f32 %v1408_v46, %v4234_v37  ;;  %3464 = vmatprep.mubr.msk.f32.mxu1 %vm1321_vm6, %v1452_v31  ;;  %v1458_v54 = vpack.c.bf16 %v1453_v43, %v1452_v31 }
 0x3aa   : > { %3465 = vmatmul.mubr.msk.f32.gmra.mrb[16].mxu1 %vm1321_vm6, %v1453_v43 }
 0x3ab   : > { %v1454_v59 = vmax.f32 %v1446_v49, 0.0  ;;  %v1432_v61 = vmul.f32 %v3184_v50, %v1417_v51  ;;  %3483 = vmatpush3.bf16.msra.mxu0 %v1458_v54  ;;  %v1457_v50 = vpack.c.bf16 %v1451_v29, %v1450_v27 }
 0x3ac   : > { %3655 = vmatprep.subr.bf16.mxu0 %v3654_v47 }
 0x3ad   : > { %v1447_v2 = vadd.f32 %v3185_v57, %v1432_v61  ;;  %3467 = vmatprep.mubr.msk.f32.mxu1 %vm1321_vm6, %v1454_v59 }
 0x3ae   : > { %3485 = vmatmul.mubr.msk.bf16.vlgmr.msra.gmra.mrb[12].mxu0 %vm772_vm1, %v4129_v11 }
 0x3af   : > { %v1455_v37 = vmax.f32 %v1447_v2, 0.0  ;;  %3657 = vmatpush3.bf16.msra.mxu0 %v3654_v47  ;;  %3502 = vmatprep.mubr.msk.f32.mxu0 %vm1321_vm6, %v1448_v9 }
 0x3b0   : > { %3659 = vmatprep.subr.bf16.mxu0 %v3658_v1 }
 0x3b1   : > { %3468 = vmatmul.mubr.msk.f32.gmra.mrb[18].mxu1 %vm1321_vm6, %v1455_v37  ;;  %v1459_v11 = vpack.c.bf16 %v1455_v37, %v1454_v59 }
 0x3b2   : > { %3472 = vmatprep.mubr.msk.bf16.mxu1 %vm3933_vm0, %v3932_v0 }
 0x3b3   : > { %3661 = vmatpush3.bf16.msra.mxu0 %v3658_v1 }
 0x3b5   : > { %3473 = vmatmul.mubr.msk.bf16.vlgmr.msra.gmra.mrb[20].mxu1 %vm772_vm1, %v4125_v4  ;;  %v1772_v4 = vld [vmem:[%s4737_s23] sm:$0xff] }
 0x3b6   : > { %3477 = vmatpush3.bf16.msra.mxu1 %v1457_v50  ;;  %3503 = vmatmul.mubr.msk.f32.vlgmr.msra.gmra.mrb[16].mxu0 %vm1321_vm6, %v1449_v7  ;;  %v1775_v7 = vld [vmem:[%s4737_s23 + $0x18] sm:$0xff] }
 0x3b7   : > { %3505 = vmatprep.mubr.msk.f32.mxu0 %vm1321_vm6, %v1450_v27  ;;  %3478 = vmatprep.mubr.msk.bf16.mxu1 %vm3933_vm0, %v3932_v0 }
 0x3b8   : > { %3488 = vmatprep.subr.bf16.mxu1 %v3932_v0 }
 0x3ba   : > { %3506 = vmatmul.mubr.msk.f32.gmra.mrb[18].mxu0 %vm1321_vm6, %v1451_v29 }
 0x3bb   : > { %3508 = vmatprep.mubr.msk.f32.mxu0 %vm1321_vm6, %v1452_v31 }
 0x3bd   : > { %3479 = vmatmul.mubr.msk.bf16.vlgmr.msra.gmra.mrb[24].mxu1 %vm772_vm1, %v4139_v14  ;;  %v1773_v14 = vld [vmem:[%s4737_s23 + $0x8] sm:$0xff] }
 0x3be   : > { %3489 = vmatpush3.bf16.msra.mxu1 %v1459_v11  ;;  %3509 = vmatmul.mubr.msk.f32.gmra.mrb[20].mxu0 %vm1321_vm6, %v1453_v43  ;;  %v3662_v57 = vpack.c.bf16 %v1773_v14, %v1772_v4  ;;  %v3215_v43 = vld [vmem:[%s4738_s7] ss:$0 sm:$0xff] }
 0x3bf   : > { %3511 = vmatprep.mubr.msk.f32.mxu0 %vm1321_vm6, %v1454_v59  ;;  %3490 = vmatprep.mubr.msk.bf16.mxu1 %vm3933_vm0, %v3932_v0 }
 0x3c0   : > { %3663 = vmatprep.subr.bf16.mxu0 %v3662_v57 }
 0x3c1   : > { %3665 = vmatpush3.bf16.msra.mxu0 %v3662_v57 }
 0x3c2   : > { %3512 = vmatmul.mubr.msk.f32.gmra.mrb[22].mxu0 %vm1321_vm6, %v1455_v37 }
 0x3c5   : > { %3491 = vmatmul.mubr.msk.bf16.vlgmr.msra.gmra.mrb[28].mxu1 %vm772_vm1, %v4146_v16  ;;  %v3666_v16 = vpack.c.bf16 %v1775_v7, %v1774_v6 }
 0x3c7   : > { %3667 = vmatprep.subr.bf16.mxu0 %v3666_v16 }
 0x3c8   : > { %3669 = vmatpush3.bf16.msra.mxu0 %v3666_v16 }
 0x3c9   : > { %3566 = vmatprep.subr.bf16.mxu0 %v3932_v0 }
 0x481   : > { %v1716_v9 = vpop.f32.mrb[12].mxu0 }
 0x482   : > { %v3486_v10 = vpop.f32.mrb[13].mxu0  ;;  %v1768_v34 = vmul.f32 %v1716_v9, %v4182_v62 }
 0x483   : > { %v1719_v13 = vpop.f32.mrb[14].mxu0 }
 0x484   : > { %v3487_v12 = vpop.f32.mrb[15].mxu0  ;;  %v1769_v23 = vmul.f32 %v1719_v13, %v4191_v3 }
 0x488   : > { %v1634_v15 = vpop.f32.mrb[20].mxu1 }
 0x489   : > { %v1764_v18 = vmul.f32 %v1634_v15, %v4171_v56  ;;  %v3474_v17 = vpop.f32.mrb[21].mxu1 }
 0x48a   : > { %v1637_v19 = vpop.f32.mrb[22].mxu1 }
 0x48b   : > { %v1765_v20 = vmul.f32 %v1637_v19, %v4175_v58  ;;  %v3475_v21 = vpop.f32.mrb[23].mxu1  ;;  %3522 = vmatprep.mubr.msk.f32.mxu0 %vm1321_vm6, %v1764_v18 }
 0x48d   : > { %3523 = vmatmul.mubr.msk.f32.vlgmr.msra.gmra.mrb[16].mxu0 %vm1321_vm6, %v1765_v20 }
 0x490   : > { %v1675_v22 = vpop.f32.mrb[24].mxu1 }
 0x491   : > { %v1766_v26 = vmul.f32 %v1675_v22, %v4179_v60  ;;  %v3480_v27 = vpop.f32.mrb[25].mxu1 }
 0x492   : > { %v1678_v28 = vpop.f32.mrb[26].mxu1 }
 0x493   : > { %v1767_v29 = vmul.f32 %v1678_v28, %v4185_v63  ;;  %v3481_v32 = vpop.f32.mrb[27].mxu1  ;;  %3525 = vmatprep.mubr.msk.f32.mxu0 %vm1321_vm6, %v1766_v26 }
 0x495   : > { %3526 = vmatmul.mubr.msk.f32.gmra.mrb[18].mxu0 %vm1321_vm6, %v1767_v29 }
 0x496   : > { %3528 = vmatprep.mubr.msk.f32.mxu0 %vm1321_vm6, %v1768_v34 }
 0x498   : > { %v1757_v35 = vpop.f32.mrb[28].mxu1 }
 0x499   : > { %v1770_v36 = vmul.f32 %v1757_v35, %v4193_v5  ;;  %v3492_v25 = vpop.f32.mrb[29].mxu1  ;;  %3529 = vmatmul.mubr.msk.f32.gmra.mrb[20].mxu0 %vm1321_vm6, %v1769_v23 }
 0x49a   : > { %v1760_v40 = vpop.f32.mrb[30].mxu1 }
 0x49b   : > { %v1771_v30 = vmul.f32 %v1760_v40, %v4199_v8  ;;  %3531 = vmatprep.mubr.msk.f32.mxu0 %vm1321_vm6, %v1770_v36  ;;  %v3493_v41 = vpop.f32.mrb[31].mxu1 }
 0x49d   : > { %3532 = vmatmul.mubr.msk.f32.gmra.mrb[22].mxu0 %vm1321_vm6, %v1771_v30 }
 0x49e   : > { %3568 = vmatprep.mubr.msk.bf16.mxu0 %vm3933_vm0, %v3932_v0 }
 0x560   : > { %v3524_v31 = vpop.f32.mrb[16].mxu0 }
 0x561   : > { %v4392_v44 = vadd.f32 %v3524_v31, %v3215_v43  ;;  %v1975_v46 = vpop.f32.mrb[17].mxu0 }
 0x562   : > { %v4394_v47 = vadd.f32 %v3215_v43, %v1975_v46 }
 0x563   : > { %v2030_v49 = vmul.f32 %v4392_v44, %v4392_v44 }
 0x564   : > { %v2029_v51 = vmul.f32 %v4394_v47, %v4394_v47 }
 0x565   : > { %v2040_v54 = vsel %vm1321_vm6, %v2030_v49, 0.0  ;;  %v2175_v49 = vld [vmem:[%s4699_s19] sm:$0xff] }
 0x566   : > { %2041 = vadd.xlane.f32.xlu0 %v2040_v54  ;;  %v2037_v38 = vsel %vm1321_vm6, %v2029_v51, 0.0  ;;  %v2176_v51 = vld [vmem:[%s4699_s19 + $0x8] sm:$0xff] }
 0x567   : > { %2038 = vadd.xlane.f32.xlu1 %v2037_v38  ;;  %v3670_v38 = vpack.c.bf16 %v2176_v51, %v2175_v49 }
 0x568   : > { %v3527_v55 = vpop.f32.mrb[18].mxu0 }
 0x569   : > { %v4402_v59 = vadd.f32 %v3527_v55, %v3215_v43  ;;  %v1985_v61 = vpop.f32.mrb[19].mxu0  ;;  %3671 = vmatprep.subr.bf16.mxu1 %v3670_v38 }
 0x56a   : > { %v4404_v1 = vadd.f32 %v3215_v43, %v1985_v61  ;;  %3673 = vmatpush3.bf16.msra.mxu1 %v3670_v38 }
 0x56b   : > { %v2032_v2 = vmul.f32 %v4402_v59, %v4402_v59 }
 0x56c   : > { %v3530_v37 = vpop.f32.mrb[20].mxu0  ;;  %v2031_v50 = vmul.f32 %v4404_v1, %v4404_v1 }
 0x56d   : > { %v4410_v11 = vadd.f32 %v3530_v37, %v3215_v43  ;;  %v1995_v4 = vpop.f32.mrb[21].mxu0  ;;  %v2046_v14 = vsel %vm1321_vm6, %v2032_v2, 0.0  ;;  %v2177_v2 = vld [vmem:[%s4699_s19 + $0x10] sm:$0xff]  ;;  %v2178_v37 = vld [vmem:[%s4699_s19 + $0x18] sm:$0xff] }
 0x56e   : > { %v4413_v57 = vadd.f32 %v3215_v43, %v1995_v4  ;;  %2047 = vadd.xlane.f32.xlu0 %v2046_v14  ;;  %v2043_v6 = vsel %vm1321_vm6, %v2031_v50, 0.0  ;;  %v3674_v50 = vpack.c.bf16 %v2178_v37, %v2177_v2 }
 0x56f   : > { %2044 = vadd.xlane.f32.xlu1 %v2043_v6  ;;  %v2034_v7 = vmul.f32 %v4410_v11, %v4410_v11 }
 0x570   : > { %v3533_v16 = vpop.f32.mrb[22].mxu0  ;;  %v2033_v9 = vmul.f32 %v4413_v57, %v4413_v57  ;;  %3675 = vmatprep.subr.bf16.mxu1 %v3674_v50 }
 0x571   : > { %v4420_v10 = vadd.f32 %v3533_v16, %v3215_v43  ;;  %v2005_v13 = vpop.f32.mrb[23].mxu0  ;;  %v2052_v12 = vsel %vm1321_vm6, %v2034_v7, 0.0  ;;  %3677 = vmatpush3.bf16.msra.mxu1 %v3674_v50 }
 0x572   : > { %v4423_v15 = vadd.f32 %v3215_v43, %v2005_v13  ;;  %2053 = vadd.xlane.f32.xlu0 %v2052_v12  ;;  %v2049_v18 = vsel %vm1321_vm6, %v2033_v9, 0.0  ;;  %3554 = vmatprep.subr.bf16.mxu1 %v3932_v0 }
 0x573   : > { %2050 = vadd.xlane.f32.xlu1 %v2049_v18  ;;  %v2036_v17 = vmul.f32 %v4420_v10, %v4420_v10 }
 0x574   : > { %v2035_v19 = vmul.f32 %v4423_v15, %v4423_v15 }
 0x575   : > { %v2058_v20 = vsel %vm1321_vm6, %v2036_v17, 0.0 }
 0x576   : > { %2059 = vadd.xlane.f32.xlu0 %v2058_v20  ;;  %v2055_v21 = vsel %vm1321_vm6, %v2035_v19, 0.0 }
 0x577   : > { %2056 = vadd.xlane.f32.xlu1 %v2055_v21  ;;  %v3216_v21 = vld [vmem:[%s4694_s14] ss:$0 sm:$0xff] }
 0x5f3   : > { %v2042_v22 = vpop.xlane.xlu0 %2041 }
 0x5f4   : > { %v2062_v26 = vmax.f32 %v2042_v22, 1e-24  ;;  %v2039_v27 = vpop.xlane.xlu1 %2038 }
 0x5f5   : > { %v2061_v28 = vmax.f32 %v2039_v27, 1e-24 }
 0x5f6   : > { %3832 = vrsqrt.f32 %v2062_v26 }
 0x5f7   : > { %3834 = vrsqrt.f32 %v2061_v28  ;;  %v3217_v28 = vld [vmem:[%s4695_s15] ss:$0 sm:$0xff] }
 0x5fb   : > { %v2048_v29 = vpop.xlane.xlu0 %2047 }
 0x5fc   : > { %v2045_v32 = vpop.xlane.xlu1 %2044  ;;  %v2064_v34 = vmax.f32 %v2048_v29, 1e-24 }
 0x5fd   : > { %v2063_v23 = vmax.f32 %v2045_v32, 1e-24 }
 0x5ff   : > { %3836 = vrsqrt.f32 %v2063_v23  ;;  %v2054_v35 = vpop.xlane.xlu0 %2053 }
 0x600   : > { %v3833_v36 = vpop.eup %3832  ;;  %v2051_v25 = vpop.xlane.xlu1 %2050  ;;  %3838 = vrsqrt.f32 %v2064_v34  ;;  %v2066_v30 = vmax.f32 %v2054_v35, 1e-24 }
 0x601   : > { %v3835_v40 = vpop.eup %3834  ;;  %v2065_v41 = vmax.f32 %v2051_v25, 1e-24  ;;  %v2078_v43 = vmul.f32 %v3833_v36, %v4256_v52 }
 0x602   : > { %v2077_v31 = vmul.f32 %v3835_v40, %v4259_v53 }
 0x603   : > { %3840 = vrsqrt.f32 %v2065_v41  ;;  %2092 = vperm.xlu0 %3794, %v2078_v43   ;;  %v2060_v46 = vpop.xlane.xlu0 %2059 }
 0x604   : > { %2087 = vperm.xlu1 %3795, %v2077_v31   ;;  %v2057_v54 = vpop.xlane.xlu1 %2056  ;;  %3842 = vrsqrt.f32 %v2066_v30  ;;  %v2068_v55 = vmax.f32 %v2060_v46, 1e-24 }
 0x605   : > { %v2067_v61 = vmax.f32 %v2057_v54, 1e-24 }
 0x607   : > { %3844 = vrsqrt.f32 %v2067_v61 }
 0x608   : > { %3846 = vrsqrt.f32 %v2068_v55 }
 0x609   : > { %v3837_v4 = vpop.eup %3836 }
 0x60a   : > { %v2079_v14 = vmul.f32 %v3837_v4, %v4281_v33  ;;  %v3839_v6 = vpop.eup %3838 }
 0x60b   : > { %v2080_v9 = vmul.f32 %v3839_v6, %v4276_v24 }
 0x60c   : > { %2097 = vperm.xlu1 %3795, %v2079_v14  }
 0x60d   : > { %v3841_v7 = vpop.eup %3840 }
 0x60e   : > { %v2081_v16 = vmul.f32 %v3841_v7, %v4289_v42  ;;  %v3843_v13 = vpop.eup %3842 }
 0x60f   : > { %v2082_v18 = vmul.f32 %v3843_v13, %v4285_v39  ;;  %v2492_v13 = vld [vmem:[%s4691_s11] sm:$0xff] }
 0x610   : > { %2107 = vperm.xlu0 %3794, %v2081_v16   ;;  %2102 = vperm.xlu1 %3795, %v2080_v9  }
 0x611   : > { %v3845_v12 = vpop.eup %3844 }
 0x612   : > { %v2083_v17 = vmul.f32 %v3845_v12, %v4293_v45  ;;  %v3847_v19 = vpop.eup %3846 }
 0x613   : > { %v2084_v20 = vmul.f32 %v3847_v19, %v4297_v48 }
 0x614   : > { %2112 = vperm.xlu1 %3795, %v2082_v18   ;;  %2117 = vperm.xlu0 %3794, %v2083_v17  }
 0x618   : > { %2122 = vperm.xlu1 %3795, %v2084_v20   ;;  %v2494_v20 = vld [vmem:[%s4691_s11 + $0x10] sm:$0xff] }
 0x682   : > { %v2093_v22 = vpop.permute.xlu0 %2092 }
 0x683   : > { %v2126_v26 = vmul.f32 %v2093_v22, %v4392_v44  ;;  %v2088_v27 = vpop.permute.xlu1 %2087  ;;  %v2495_v22 = vld [vmem:[%s4691_s11 + $0x18] sm:$0xff] }
 0x684   : > { %v2125_v29 = vmul.f32 %v2088_v27, %v4394_v47  ;;  %v2488_v27 = vld [vmem:[%s4689_s9] sm:$0xff] }
 0x685   : > { %v2141_v32 = vmul.f32 %v3216_v21, %v2126_v26 }
 0x686   : > { %v2140_v34 = vmul.f32 %v3216_v21, %v2125_v29  ;;  %v3864_v29 = vld [vmem:[%s4122_s3 + $0x10] sm:$0xff]  }
 0x687   : > { %v2156_v23 = vadd.f32 %v3217_v28, %v2141_v32 }
 0x688   : > { %v2155_v35 = vadd.f32 %v3217_v28, %v2140_v34 }
 0x689   : > { %v4461_v36 = vmax.f32 %v2156_v23, 0.0  ;;  %v3865_v23 = vld [vmem:[%s4122_s3] sm:$0xff]  }
 0x68a   : > { %v2163_v25 = vmax.f32 %v2155_v35, 0.0 }
 0x68b   : > { %v2098_v40 = vpop.permute.xlu1 %2097 }
 0x68c   : > { %v2127_v30 = vmul.f32 %v2098_v40, %v4404_v1  ;;  %3542 = vmatprep.mubr.msk.f32.mxu1 %vm1321_vm6, %v2163_v25  ;;  %v2171_v44 = vpack.c.bf16 %v4461_v36, %v2163_v25  ;;  %v2490_v40 = vld [vmem:[%s4689_s9 + $0x10] sm:$0xff] }
 0x68d   : > { %3543 = vmatmul.mubr.msk.f32.vlgmr.msra.gmra.mrb[12].mxu1 %vm1321_vm6, %v4461_v36 }
 0x68e   : > { %v2142_v41 = vmul.f32 %v3216_v21, %v2127_v30  ;;  %3555 = vmatpush3.bf16.msra.mxu1 %v2171_v44  ;;  %v2491_v30 = vld [vmem:[%s4689_s9 + $0x18] sm:$0xff] }
 0x68f   : > { %v2108_v47 = vpop.permute.xlu0 %2107  ;;  %v2103_v43 = vpop.permute.xlu1 %2102  ;;  %3560 = vmatprep.subr.bf16.mxu1 %v3932_v0  ;;  %v3690_v44 = vpack.c.bf16 %v2491_v30, %v2490_v40 }
 0x690   : > { %v2157_v31 = vadd.f32 %v3217_v28, %v2142_v41  ;;  %v2129_v46 = vmul.f32 %v2108_v47, %v4413_v57  ;;  %v2128_v49 = vmul.f32 %v2103_v43, %v4402_v59 }
 0x692   : > { %v2165_v51 = vmax.f32 %v2157_v31, 0.0  ;;  %v2144_v1 = vmul.f32 %v3216_v21, %v2129_v46  ;;  %v2143_v54 = vmul.f32 %v3216_v21, %v2128_v49 }
 0x693   : > { %v2118_v38 = vpop.permute.xlu0 %2117  ;;  %v2113_v55 = vpop.permute.xlu1 %2112 }
 0x694   : > { %v2159_v61 = vadd.f32 %v3217_v28, %v2144_v1  ;;  %v2158_v2 = vadd.f32 %v3217_v28, %v2143_v54  ;;  %v2131_v37 = vmul.f32 %v2118_v38, %v4423_v15  ;;  %v2130_v50 = vmul.f32 %v2113_v55, %v4410_v11  ;;  %3545 = vmatprep.mubr.msk.f32.mxu1 %vm1321_vm6, %v2165_v51  ;;  %v2493_v11 = vld [vmem:[%s4691_s11 + $0x8] sm:$0xff] }
 0x695   : > { %v3678_v17 = vpack.c.bf16 %v2493_v11, %v2492_v13 }
 0x696   : > { %v2167_v4 = vmax.f32 %v2159_v61, 0.0  ;;  %v2166_v14 = vmax.f32 %v2158_v2, 0.0  ;;  %v2146_v6 = vmul.f32 %v3216_v21, %v2131_v37  ;;  %v2145_v7 = vmul.f32 %v3216_v21, %v2130_v50 }
 0x697   : > { %v2123_v57 = vpop.permute.xlu1 %2122 }
 0x698   : > { %v2161_v16 = vadd.f32 %v3217_v28, %v2146_v6  ;;  %v2160_v59 = vadd.f32 %v3217_v28, %v2145_v7  ;;  %v2132_v9 = vmul.f32 %v2123_v57, %v4420_v10  ;;  %3546 = vmatmul.mubr.msk.f32.gmra.mrb[14].mxu1 %vm1321_vm6, %v2166_v14  ;;  %v2172_v32 = vpack.c.bf16 %v2166_v14, %v2165_v51 }
 0x699   : > { %3548 = vmatprep.mubr.msk.f32.mxu1 %vm1321_vm6, %v2167_v4 }
 0x69a   : > { %v2169_v15 = vmax.f32 %v2161_v16, 0.0  ;;  %v2168_v12 = vmax.f32 %v2160_v59, 0.0  ;;  %v2147_v18 = vmul.f32 %v3216_v21, %v2132_v9  ;;  %v3682_v21 = vpack.c.bf16 %v2495_v22, %v2494_v20 }
 0x69c   : > { %v2162_v19 = vadd.f32 %v3217_v28, %v2147_v18  ;;  %3549 = vmatmul.mubr.msk.f32.gmra.mrb[16].mxu1 %vm1321_vm6, %v2168_v12  ;;  %v2173_v10 = vpack.c.bf16 %v2168_v12, %v2167_v4  ;;  %v2489_v28 = vld [vmem:[%s4689_s9 + $0x8] sm:$0xff] }
 0x69d   : > { %3551 = vmatprep.mubr.msk.f32.mxu1 %vm1321_vm6, %v2169_v15  ;;  %v3686_v34 = vpack.c.bf16 %v2489_v28, %v2488_v27 }
 0x69e   : > { %v2170_v26 = vmax.f32 %v2162_v19, 0.0  ;;  %3567 = vmatpush3.bf16.msra.mxu0 %v2173_v10 }
 0x69f   : > { %3679 = vmatprep.subr.bf16.mxu0 %v3678_v17 }
 0x6a0   : > { %3552 = vmatmul.mubr.msk.f32.gmra.mrb[18].mxu1 %vm1321_vm6, %v2170_v26  ;;  %v2174_v35 = vpack.c.bf16 %v2170_v26, %v2169_v15 }
 0x6a1   : > { %3569 = vmatmul.mubr.msk.bf16.vlgmr.msra.gmra.mrb[24].mxu0 %vm772_vm1, %v3864_v29  ;;  %3556 = vmatprep.mubr.msk.bf16.mxu1 %vm3933_vm0, %v3932_v0 }
 0x6a2   : > { %3681 = vmatpush3.bf16.msra.mxu0 %v3678_v17  ;;  %3586 = vmatprep.mubr.msk.f32.mxu0 %vm1321_vm6, %v2163_v25  ;;  %v3866_v25 = vld [vmem:[%s4122_s3 + $0x8] sm:$0xff]  }
 0x6a3   : > { %3683 = vmatprep.subr.bf16.mxu0 %v3682_v21 }
 0x6a4   : > { %3557 = vmatmul.mubr.msk.bf16.vlgmr.msra.gmra.mrb[32].mxu1 %vm772_vm1, %v3865_v23 }
 0x6a5   : > { %3561 = vmatpush3.bf16.msra.mxu1 %v2172_v32  ;;  %3562 = vmatprep.mubr.msk.bf16.mxu1 %vm3933_vm0, %v3932_v0 }
 0x6a6   : > { %3685 = vmatpush3.bf16.msra.mxu0 %v3682_v21  ;;  %3572 = vmatprep.subr.bf16.mxu1 %v3932_v0 }
 0x6a7   : > { %3687 = vmatprep.subr.bf16.mxu0 %v3686_v34 }
 0x6a9   : > { %3587 = vmatmul.mubr.msk.f32.vlgmr.msra.gmra.mrb[28].mxu0 %vm1321_vm6, %v4461_v36  ;;  %v3867_v36 = vld [vmem:[%s4122_s3 + $0x18] sm:$0xff]  }
 0x6aa   : > { %3589 = vmatprep.mubr.msk.f32.mxu0 %vm1321_vm6, %v2165_v51  ;;  %3689 = vmatpush3.bf16.msra.mxu0 %v3686_v34 }
 0x6ab   : > { %3691 = vmatprep.subr.bf16.mxu0 %v3690_v44 }
 0x6ac   : > { %3563 = vmatmul.mubr.msk.bf16.vlgmr.msra.gmra.mrb[36].mxu1 %vm772_vm1, %v3866_v25 }
 0x6ad   : > { %3573 = vmatpush3.bf16.msra.mxu1 %v2174_v35  ;;  %3590 = vmatmul.mubr.msk.f32.gmra.mrb[30].mxu0 %vm1321_vm6, %v2166_v14 }
 0x6ae   : > { %3592 = vmatprep.mubr.msk.f32.mxu0 %vm1321_vm6, %v2167_v4  ;;  %3574 = vmatprep.mubr.msk.bf16.mxu1 %vm3933_vm0, %v3932_v0 }
 0x6af   : > { %3693 = vmatpush3.bf16.msra.mxu0 %v3690_v44 }
 0x6b1   : > { %3593 = vmatmul.mubr.msk.f32.gmra.mrb[32].mxu0 %vm1321_vm6, %v2168_v12 }
 0x6b2   : > { %3595 = vmatprep.mubr.msk.f32.mxu0 %vm1321_vm6, %v2169_v15 }
 0x6b4   : > { %3575 = vmatmul.mubr.msk.bf16.vlgmr.msra.gmra.mrb[40].mxu1 %vm772_vm1, %v3867_v36 }
 0x6b5   : > { %3596 = vmatmul.mubr.msk.f32.gmra.mrb[34].mxu0 %vm1321_vm6, %v2170_v26 }
 0x774   : > { %v2432_v0 = vpop.f32.mrb[24].mxu0 }
 0x775   : > { %v3570_v41 = vpop.f32.mrb[25].mxu0 }
 0x776   : > { %v2435_v47 = vpop.f32.mrb[26].mxu0 }
 0x777   : > { %v2350_v43 = vpop.f32.mrb[32].mxu1  ;;  %v3571_v31 = vpop.f32.mrb[27].mxu0 }
 0x778   : > { %v2480_v46 = vmul.f32 %v2350_v43, %v4171_v56  ;;  %v3558_v49 = vpop.f32.mrb[33].mxu1  ;;  %v2484_v56 = vmul.f32 %v2432_v0, %v4182_v62  ;;  %v3246_v62 = vld [vmem:[%s4690_s10] ss:$0 sm:$0xff] }
 0x779   : > { %v2353_v51 = vpop.f32.mrb[34].mxu1 }
 0x77a   : > { %v2481_v1 = vmul.f32 %v2353_v51, %v4175_v58  ;;  %v3559_v54 = vpop.f32.mrb[35].mxu1  ;;  %3606 = vmatprep.mubr.msk.f32.mxu0 %vm1321_vm6, %v2480_v46  ;;  %v2485_v58 = vmul.f32 %v2435_v47, %v4191_v3 }
 0x77c   : > { %3607 = vmatmul.mubr.msk.f32.vlgmr.msra.gmra.mrb[28].mxu0 %vm1321_vm6, %v2481_v1 }
 0x77f   : > { %v2391_v38 = vpop.f32.mrb[36].mxu1 }
 0x780   : > { %v2482_v55 = vmul.f32 %v2391_v38, %v4179_v60  ;;  %v3564_v61 = vpop.f32.mrb[37].mxu1 }
 0x781   : > { %v2394_v2 = vpop.f32.mrb[38].mxu1 }
 0x782   : > { %v2483_v37 = vmul.f32 %v2394_v2, %v4185_v63  ;;  %v3565_v50 = vpop.f32.mrb[39].mxu1  ;;  %3609 = vmatprep.mubr.msk.f32.mxu0 %vm1321_vm6, %v2482_v55 }
 0x784   : > { %3610 = vmatmul.mubr.msk.f32.gmra.mrb[30].mxu0 %vm1321_vm6, %v2483_v37 }
 0x785   : > { %3612 = vmatprep.mubr.msk.f32.mxu0 %vm1321_vm6, %v2484_v56 }
 0x787   : > { %v2473_v4 = vpop.f32.mrb[40].mxu1 }
 0x788   : > { %v2486_v14 = vmul.f32 %v2473_v4, %v4193_v5  ;;  %v3576_v6 = vpop.f32.mrb[41].mxu1  ;;  %3613 = vmatmul.mubr.msk.f32.gmra.mrb[32].mxu0 %vm1321_vm6, %v2485_v58 }
 0x789   : > { %v2476_v60 = vpop.f32.mrb[42].mxu1  ;;  %v2888_v6 = vld [vmem:[%s4700_s20 + $0x8] sm:$0xff] }
 0x78a   : > { %v2487_v63 = vmul.f32 %v2476_v60, %v4199_v8  ;;  %3615 = vmatprep.mubr.msk.f32.mxu0 %vm1321_vm6, %v2486_v14  ;;  %v3577_v7 = vpop.f32.mrb[43].mxu1  ;;  %v2887_v14 = vld [vmem:[%s4700_s20] sm:$0xff] }
 0x78c   : > { %3616 = vmatmul.mubr.msk.f32.gmra.mrb[34].mxu0 %vm1321_vm6, %v2487_v63 }
 0x84f   : > { %v3608_v57 = vpop.f32.mrb[28].mxu0 }
 0x850   : > { %v4547_v3 = vadd.f32 %v3608_v57, %v3246_v62  ;;  %v2691_v16 = vpop.f32.mrb[29].mxu0 }
 0x851   : > { %v4549_v5 = vadd.f32 %v3246_v62, %v2691_v16 }
 0x852   : > { %v2746_v59 = vmul.f32 %v4547_v3, %v4547_v3 }
 0x853   : > { %v2745_v8 = vmul.f32 %v4549_v5, %v4549_v5 }
 0x854   : > { %v2756_v9 = vsel %vm772_vm1, %v2746_v59, 0.0 }
 0x855   : > { %2757 = vadd.xlane.f32.xlu1 %v2756_v9  ;;  %v2753_v13 = vsel %vm772_vm1, %v2745_v8, 0.0 }
 0x856   : > { %2754 = vadd.xlane.f32.xlu0 %v2753_v13 }
 0x857   : > { %v3611_v11 = vpop.f32.mrb[30].mxu0 }
 0x858   : > { %v4557_v15 = vadd.f32 %v3611_v11, %v3246_v62  ;;  %v2701_v12 = vpop.f32.mrb[31].mxu0 }
 0x859   : > { %v4559_v18 = vadd.f32 %v3246_v62, %v2701_v12 }
 0x85a   : > { %v2748_v20 = vmul.f32 %v4557_v15, %v4557_v15 }
 0x85b   : > { %v3614_v17 = vpop.f32.mrb[32].mxu0  ;;  %v2747_v19 = vmul.f32 %v4559_v18, %v4559_v18 }
 0x85c   : > { %v2711_v10 = vpop.f32.mrb[33].mxu0  ;;  %v4565_v22 = vadd.f32 %v3614_v17, %v3246_v62  ;;  %v2762_v32 = vsel %vm772_vm1, %v2748_v20, 0.0 }
 0x85d   : > { %v4567_v26 = vadd.f32 %v3246_v62, %v2711_v10  ;;  %v2759_v21 = vsel %vm772_vm1, %v2747_v19, 0.0 }
 0x85e   : > { %2760 = vadd.xlane.f32.xlu0 %v2759_v21  ;;  %v2750_v25 = vmul.f32 %v4565_v22, %v4565_v22 }
 0x85f   : > { %v3617_v27 = vpop.f32.mrb[34].mxu0  ;;  %v2749_v28 = vmul.f32 %v4567_v26, %v4567_v26 }
 0x860   : > { %v2721_v29 = vpop.f32.mrb[35].mxu0  ;;  %v4573_v34 = vadd.f32 %v3617_v27, %v3246_v62  ;;  %v2768_v40 = vsel %vm772_vm1, %v2750_v25, 0.0 }
 0x861   : > { %v4575_v23 = vadd.f32 %v3246_v62, %v2721_v29  ;;  %v2765_v35 = vsel %vm772_vm1, %v2749_v28, 0.0 }
 0x862   : > { %2763 = vadd.xlane.f32.xlu0 %v2762_v32  ;;  %2766 = vadd.xlane.f32.xlu1 %v2765_v35  ;;  %v2752_v44 = vmul.f32 %v4573_v34, %v4573_v34 }
 0x863   : > { %v2751_v36 = vmul.f32 %v4575_v23, %v4575_v23 }
 0x864   : > { %v2774_v0 = vsel %vm772_vm1, %v2752_v44, 0.0 }
 0x865   : > { %v2771_v30 = vsel %vm772_vm1, %v2751_v36, 0.0 }
 0x866   : > { %2769 = vadd.xlane.f32.xlu0 %v2768_v40  ;;  %2772 = vadd.xlane.f32.xlu1 %v2771_v30 }
 0x86a   : > { %2775 = vadd.xlane.f32.xlu0 %v2774_v0 }
 0x8e2   : > { %v2758_v41 = vpop.xlane.xlu1 %2757 }
 0x8e3   : > { %v2778_v47 = vmax.f32 %v2758_v41, 1e-24  ;;  %v2755_v43 = vpop.xlane.xlu0 %2754 }
 0x8e4   : > { %v2777_v31 = vmax.f32 %v2755_v43, 1e-24 }
 0x8e5   : > { %3848 = vrsqrt.f32 %v2778_v47 }
 0x8e6   : > { %3850 = vrsqrt.f32 %v2777_v31 }
 0x8eb   : > { %v2761_v46 = vpop.xlane.xlu0 %2760 }
 0x8ec   : > { %v2779_v49 = vmax.f32 %v2761_v46, 1e-24 }
 0x8ee   : > { %3852 = vrsqrt.f32 %v2779_v49 }
 0x8ef   : > { %v3849_v51 = vpop.eup %3848  ;;  %v2764_v1 = vpop.xlane.xlu0 %2763 }
 0x8f0   : > { %v2767_v54 = vpop.xlane.xlu1 %2766  ;;  %v3851_v38 = vpop.eup %3850  ;;  %v2780_v55 = vmax.f32 %v2764_v1, 1e-24  ;;  %v2794_v2 = vmul.f32 %v3849_v51, %v4256_v52 }
 0x8f1   : > { %v2781_v61 = vmax.f32 %v2767_v54, 1e-24  ;;  %v2793_v37 = vmul.f32 %v3851_v38, %v4259_v53  ;;  %v3694_v53 = vpack.c.bf16 %v2888_v6, %v2887_v14 }
 0x8f2   : > { %3854 = vrsqrt.f32 %v2780_v55  ;;  %2808 = vperm.xlu0 %3794, %v2794_v2  }
 0x8f3   : > { %3856 = vrsqrt.f32 %v2781_v61  ;;  %v2770_v50 = vpop.xlane.xlu0 %2769  ;;  %2803 = vperm.xlu1 %3795, %v2793_v37   ;;  %3695 = vmatprep.subr.bf16.mxu1 %v3694_v53 }
 0x8f4   : > { %v2773_v56 = vpop.xlane.xlu1 %2772  ;;  %v2782_v58 = vmax.f32 %v2770_v50, 1e-24  ;;  %3697 = vmatpush3.bf16.msra.mxu1 %v3694_v53 }
 0x8f5   : > { %v2783_v4 = vmax.f32 %v2773_v56, 1e-24 }
 0x8f6   : > { %3858 = vrsqrt.f32 %v2782_v58 }
 0x8f7   : > { %3860 = vrsqrt.f32 %v2783_v4  ;;  %v2776_v52 = vpop.xlane.xlu0 %2775 }
 0x8f8   : > { %v3853_v60 = vpop.eup %3852  ;;  %v2784_v63 = vmax.f32 %v2776_v52, 1e-24 }
 0x8f9   : > { %v2795_v7 = vmul.f32 %v3853_v60, %v4281_v33 }
 0x8fa   : > { %3862 = vrsqrt.f32 %v2784_v63 }
 0x8fb   : > { %2813 = vperm.xlu1 %3795, %v2795_v7  }
 0x8fc   : > { %v3855_v62 = vpop.eup %3854 }
 0x8fd   : > { %v3857_v57 = vpop.eup %3856  ;;  %v2796_v16 = vmul.f32 %v3855_v62, %v4276_v24  ;;  %v3247_v24 = vld [vmem:[%s4696_s16] ss:$0 sm:$0xff] }
 0x8fe   : > { %v2797_v59 = vmul.f32 %v3857_v57, %v4289_v42 }
 0x8ff   : > { %2818 = vperm.xlu1 %3795, %v2796_v16  }
 0x900   : > { %v3859_v8 = vpop.eup %3858  ;;  %2823 = vperm.xlu0 %3794, %v2797_v59  }
 0x901   : > { %v3861_v9 = vpop.eup %3860  ;;  %v2798_v13 = vmul.f32 %v3859_v8, %v4285_v39  ;;  %v3248_v39 = vld [vmem:[%s4697_s17] ss:$0 sm:$0xff] }
 0x902   : > { %v2799_v11 = vmul.f32 %v3861_v9, %v4293_v45 }
 0x903   : > { %2828 = vperm.xlu1 %3795, %v2798_v13  }
 0x904   : > { %v3863_v33 = vpop.eup %3862  ;;  %2833 = vperm.xlu0 %3794, %v2799_v11  }
 0x905   : > { %v2800_v12 = vmul.f32 %v3863_v33, %v4297_v48 }
 0x907   : > { %2838 = vperm.xlu1 %3795, %v2800_v12  }
 0x971   : > { %v2809_v17 = vpop.permute.xlu0 %2808 }
 0x972   : > { %v2842_v42 = vmul.f32 %v2809_v17, %v4547_v3  ;;  %v2804_v19 = vpop.permute.xlu1 %2803 }
 0x973   : > { %v2841_v45 = vmul.f32 %v2804_v19, %v4549_v5 }
 0x974   : > { %v2857_v10 = vmul.f32 %v3247_v24, %v2842_v42 }
 0x975   : > { %v2856_v20 = vmul.f32 %v3247_v24, %v2841_v45 }
 0x976   : > { %v2872_v21 = vadd.f32 %v3248_v39, %v2857_v10 }
 0x977   : > { %v2871_v27 = vadd.f32 %v3248_v39, %v2856_v20 }
 0x978   : > { %v2880_v28 = vmax.f32 %v2872_v21, 0.0 }
 0x979   : > { %v2879_v48 = vmax.f32 %v2871_v27, 0.0 }
 0x97a   : > { %v2814_v29 = vpop.permute.xlu1 %2813 }
 0x97b   : > { %v2843_v32 = vmul.f32 %v2814_v29, %v4559_v18  ;;  %3622 = vmatprep.mubr.msk.f32.mxu1 %vm772_vm1, %v2879_v48 }
 0x97c   : > { %3623 = vmatmul.mubr.msk.f32.vlgmr.msra.gmra.mrb[12].mxu1 %vm772_vm1, %v2880_v28 }
 0x97d   : > { %v2858_v3 = vmul.f32 %v3247_v24, %v2843_v32 }
 0x97e   : > { %v2819_v35 = vpop.permute.xlu1 %2818 }
 0x97f   : > { %v2873_v25 = vadd.f32 %v3248_v39, %v2858_v3  ;;  %v2824_v36 = vpop.permute.xlu0 %2823  ;;  %v2844_v40 = vmul.f32 %v2819_v35, %v4557_v15 }
 0x980   : > { %v2845_v5 = vmul.f32 %v2824_v36, %v4567_v26 }
 0x981   : > { %v2881_v30 = vmax.f32 %v2873_v25, 0.0  ;;  %v2859_v44 = vmul.f32 %v3247_v24, %v2844_v40 }
 0x982   : > { %v2860_v0 = vmul.f32 %v3247_v24, %v2845_v5  ;;  %v2829_v41 = vpop.permute.xlu1 %2828 }
 0x983   : > { %v2874_v47 = vadd.f32 %v3248_v39, %v2859_v44  ;;  %v2834_v43 = vpop.permute.xlu0 %2833  ;;  %v2846_v18 = vmul.f32 %v2829_v41, %v4565_v22  ;;  %3625 = vmatprep.mubr.msk.f32.mxu1 %vm772_vm1, %v2881_v30 }
 0x984   : > { %v2875_v31 = vadd.f32 %v3248_v39, %v2860_v0  ;;  %v2847_v46 = vmul.f32 %v2834_v43, %v4575_v23 }
 0x985   : > { %v2882_v49 = vmax.f32 %v2874_v47, 0.0  ;;  %v2861_v51 = vmul.f32 %v3247_v24, %v2846_v18 }
 0x986   : > { %v2883_v1 = vmax.f32 %v2875_v31, 0.0  ;;  %v2862_v15 = vmul.f32 %v3247_v24, %v2847_v46  ;;  %v2839_v54 = vpop.permute.xlu1 %2838 }
 0x987   : > { %v2876_v26 = vadd.f32 %v3248_v39, %v2861_v51  ;;  %v2848_v38 = vmul.f32 %v2839_v54, %v4573_v34  ;;  %3626 = vmatmul.mubr.msk.f32.gmra.mrb[14].mxu1 %vm772_vm1, %v2882_v49  ;;  %v3186_v34 = vld [vmem:[%s4701_s21] ss:$0 sm:$0xff] }
 0x988   : > { %v2877_v55 = vadd.f32 %v3248_v39, %v2862_v15  ;;  %3628 = vmatprep.mubr.msk.f32.mxu1 %vm772_vm1, %v2883_v1 }
 0x989   : > { %v2884_v22 = vmax.f32 %v2876_v26, 0.0  ;;  %v2863_v61 = vmul.f32 %v3247_v24, %v2848_v38 }
 0x98a   : > { %v2885_v2 = vmax.f32 %v2877_v55, 0.0 }
 0x98b   : > { %v2878_v37 = vadd.f32 %v3248_v39, %v2863_v61  ;;  %3629 = vmatmul.mubr.msk.f32.gmra.mrb[16].mxu1 %vm772_vm1, %v2884_v22 }
 0x98c   : > { %3631 = vmatprep.mubr.msk.f32.mxu1 %vm772_vm1, %v2885_v2 }
 0x98d   : > { %v2886_v23 = vmax.f32 %v2878_v37, 0.0 }
 0x98f   : > { %3632 = vmatmul.mubr.msk.f32.gmra.mrb[18].mxu1 %vm772_vm1, %v2886_v23 }
 0xa4f   : > { %v3624_v50 = vpop.f32.mrb[12].mxu1 }
 0xa50   : > { %v3698_v56 = vadd.f32 %v3624_v50, %v3186_v34  ;;  %v2979_v58 = vpop.f32.mrb[13].mxu1 }
 0xa51   : > { %v3699_v4 = vadd.f32 %v3186_v34, %v2979_v58 }
 0xa52   : > { %v3027_v14 = vmax.f32 %v3698_v56, 0.0 }
 0xa53   : > { %v3026_v6 = vmax.f32 %v3699_v4, 0.0 }
 0xa54   : > { %3035 = vst [vmem:[%s715_s25 + $0x8] sm:$0xff] %v3027_v14 }
 0xa55   : > { %3034 = vst [vmem:[%s715_s25] sm:$0xff] %v3026_v6 }
 0xa5a   : > { %v3627_v52 = vpop.f32.mrb[14].mxu1 }
 0xa5b   : > { %v3700_v53 = vadd.f32 %v3627_v52, %v3186_v34  ;;  %v2989_v60 = vpop.f32.mrb[15].mxu1 }
 0xa5c   : > { %v3701_v63 = vadd.f32 %v3186_v34, %v2989_v60 }
 0xa5d   : > { %v3029_v7 = vmax.f32 %v3700_v53, 0.0 }
 0xa5e   : > { %v3028_v62 = vmax.f32 %v3701_v63, 0.0  ;;  %v3630_v57 = vpop.f32.mrb[16].mxu1 }
 0xa5f   : > { %3037 = vst [vmem:[%s715_s25 + $0x18] sm:$0xff] %v3029_v7  ;;  %v3702_v16 = vadd.f32 %v3630_v57, %v3186_v34  ;;  %v2999_v59 = vpop.f32.mrb[17].mxu1 }
 0xa60   : > { %3036 = vst [vmem:[%s715_s25 + $0x10] sm:$0xff] %v3028_v62  ;;  %v3703_v8 = vadd.f32 %v3186_v34, %v2999_v59 }
 0xa61   : > { %v3031_v9 = vmax.f32 %v3702_v16, 0.0 }
 0xa62   : > { %v3030_v13 = vmax.f32 %v3703_v8, 0.0  ;;  %v3633_v11 = vpop.f32.mrb[18].mxu1 }
 0xa63   : > { %3039 = vst [vmem:[%s715_s25 + $0x28] sm:$0xff] %v3031_v9  ;;  %v3704_v33 = vadd.f32 %v3633_v11, %v3186_v34  ;;  %v3009_v12 = vpop.f32.mrb[19].mxu1 }
 0xa64   : > { %3038 = vst [vmem:[%s715_s25 + $0x20] sm:$0xff] %v3030_v13  ;;  %v3705_v24 = vadd.f32 %v3186_v34, %v3009_v12 }
 0xa65   : > { %v3033_v17 = vmax.f32 %v3704_v33, 0.0 }
 0xa66   : > { %v3032_v42 = vmax.f32 %v3705_v24, 0.0 }
 0xa67   : > { %3041 = vst [vmem:[%s715_s25 + $0x38] sm:$0xff] %v3033_v17 }
 0xa68   : > { %3040 = vst [vmem:[%s715_s25 + $0x30] sm:$0xff] %v3032_v42 }
 0xa69   : > { %3881 = shalt.err (!%p3878_p3)
}
 0xa6a   : > { %s3882_s30 = scalar_lea.hbm %s4633_s2, 1024  ;;  %s3886_s1 = scalar_lea.hbm %s4702_s22, 2048 }
 0xa6b   : > { %p3883_p4 = scmp.ne.s32.totalorder %s4633_s2, %s3882_s30  ;;  %p3887_p9 = scmp.lt.u32.totalorder %s4633_s2, %s4702_s22 }
 0xa6c   : > { %p3888_p10 = scmp.lt.u32.totalorder %s3886_s1, %s3882_s30  ;;  %p3890_p12 = scmp.lt.u32.totalorder %s3882_s30, %s4633_s2 }
 0xa6d   : > { %p3884_p7 = pnand %p3883_p4, %p4093_p5 }
 0xa6e   : > { %p3889_p11 = por %p3888_p10, %p3887_p9 }
 0xa6f   : > { %p3885_p8 = pneg %p3884_p7 }
 0xa70   : > { %p3891_p13 = por %p3890_p12, %p3889_p11 }
 0xa72   : > { %p3892_p0 = pnand %p3891_p13, %p3885_p8 }
 0xa74   : > { %3895 = shalt.err (!%p3892_p0)
}
 0xa75   : > { %s3938_s29 = smov 128   ;;  %s3939_s27 = smov 8  }
 0xa76   : > { %3746 = dma.vmem_to_hbm [thread:$0]  (%p4093_p5), %s4635_s0, 1024, %s4633_s2, %s4639_s4, %s3938_s29, %s3938_s29, %s3939_s27  }
 0xa77 PF: > { %s4739_s25 = sld [smem:[#allocation7_spill]]  ;;  %s4740_s3 = sld [smem:[#allocation5_spill]] }
 0xa7d   : > { %p3752_p1 = scmp.ge.s32.totalorder %s4739_s25, 2  ;;  %s3072_s5 = sand.u32 1, %s4740_s3  }
 0xa7e   : > { %s3073_s30 = scalar_lea.sflag [#allocation3], %s3072_s5 }
 0xa7f   : > { %p3749_p2 = pnand %p3752_p1, %p4097_p6 }
 0xa81   : > { %3913 = dma.done.wait (!%p3749_p2), %s3073_s30, 1024  }
 0xa82   : > { %3915 = vsyncadd (!%p3749_p2), %s3073_s30, 4294966272  ;;  %s4742_s30 = sld [smem:[#allocation8_spill]]  ;;  %s4743_s1 = sld [smem:[#allocation6_spill]] }
 0xa83   : > { %s4744_s29 = sld [smem:[#allocation9_spill]]  ;;  %s4745_s3 = smov %s3922_s28 }
 0xa88   : > { %p32_p3 = scmp.ge.s32.totalorder %s4742_s30, 4   ;;  %s4746_s28 = smov %s4743_s1 }
 0xa8a   :  { %34 = sbr.rel (!%p32_p3) target bundleno = 12 (0xc), region = 149 }
 0xa91   :  { %3078 = vsyncpa [#allocation3], 1 }
 0xa92   :  { %3080 = vsyncpa [#allocation3 + $0x1], 1 }

</bundles_post_ra>
